<compile_context>
chip_gen: v7x
topology: tpu7x:2x2x1
jax: 0.10.0
libtpu: 0.0.40
codegen_flags: <defaults>
</compile_context>

<pallas_src>
import math
from functools import partial

import jax
import jax.numpy as jnp
from jax.experimental import pallas as pl
from jax.experimental.pallas import tpu as pltpu

_BN_EPS = 1e-5
_LANE = 128


def _gelu_exact(x):
    # Exact (erf-based) GELU matching torch.nn.GELU() default.
    # erf via the Abramowitz-Stegun 7.1.26 polynomial; the approximate EUP
    # reciprocal (vrcp) limits overall GELU accuracy to roughly 1e-4 relative
    # (well inside the test tolerance) and keeps the divide off the busy VPU.
    a1, a2, a3, a4, a5 = (0.254829592, -0.284496736, 1.421413741,
                          -1.453152027, 1.061405429)
    p = 0.3275911
    z = x * 0.7071067811865476  # x / sqrt(2)
    az = jnp.abs(z)
    t = pl.reciprocal(1.0 + p * az, approx=True)
    poly = ((((a5 * t + a4) * t + a3) * t + a2) * t + a1) * t
    erf_abs = 1.0 - poly * jnp.exp(-az * az)
    erf = jnp.where(z >= 0.0, erf_abs, -erf_abs)
    return 0.5 * x * (1.0 + erf)


def _leff_kernel(x_ref, masks_ref, w1_ref, b1_ref, wdw_ref, b2_ref, w3_ref,
                 b3_ref, out_ref, *, W):
    M = x_ref.shape[0]
    Cp = wdw_ref.shape[1]

    # --- conv1 (1x1) + folded BN1 + GELU (bf16 MXU, f32 accumulate) ----------
    h = jnp.dot(x_ref[...], w1_ref[...], preferred_element_type=jnp.float32)
    h = _gelu_exact(h + b1_ref[...])                       # (M, Cp) f32

    # --- host-precomputed boundary masks (constant across grid steps) --------
    masks = masks_ref[...]                                 # (M, 4) f32
    m_srcL = masks[:, 0:1]   # source mask for x-1 taps (zero where x == W-1)
    m_srcR = masks[:, 1:2]   # source mask for x+1 taps (zero where x == 0)
    m_up = masks[:, 2:3]     # dest   mask for y-1 taps (zero where y == 0)
    m_dn = masks[:, 3:4]     # dest   mask for y+1 taps (zero where y == H-1)

    wdw = wdw_ref[...]                                     # (9, Cp), (ky*3+kx, c)
    b2 = b2_ref[...]

    # --- conv2 (3x3 dw, pad 1) + BN2 + GELU, fused with conv3 (1x1) + BN3 ----
    # pltpu.roll matches jnp.roll (out[i] = in[i - shift]); all shifts are on
    # the flattened row axis.  Source-side column masks zero exactly the rows
    # that would wrap across an image / batch-tile edge in the +-1 rolls; the
    # destination-side row masks do the same for the +-W rolls.
    o_acc = None
    for c0 in range(0, Cp, _LANE):
        c1 = c0 + _LANE
        hc = h[:, c0:c1]
        rL = pltpu.roll(hc * m_srcL, shift=1, axis=0)      # reads in[y, x-1]
        rR = pltpu.roll(hc * m_srcR, shift=M - 1, axis=0)  # reads in[y, x+1]
        p_top = wdw[0:1, c0:c1] * rL + wdw[1:2, c0:c1] * hc + wdw[2:3, c0:c1] * rR
        p_mid = wdw[3:4, c0:c1] * rL + wdw[4:5, c0:c1] * hc + wdw[5:6, c0:c1] * rR
        p_bot = wdw[6:7, c0:c1] * rL + wdw[7:8, c0:c1] * hc + wdw[8:9, c0:c1] * rR
        acc = (p_mid
               + m_up * pltpu.roll(p_top, shift=W, axis=0)        # row above
               + m_dn * pltpu.roll(p_bot, shift=M - W, axis=0))   # row below
        h2c = _gelu_exact(acc + b2[:, c0:c1]).astype(jnp.bfloat16)
        # conv3 fused per chunk: no (M, Cp) bf16 intermediate is materialized
        # and the MXU dot interleaves with the next chunk's VPU/XLU work.
        d = jnp.dot(h2c, w3_ref[c0:c1, :], preferred_element_type=jnp.float32)
        o_acc = d if o_acc is None else o_acc + d

    out_ref[...] = (o_acc + b3_ref[...]).astype(out_ref.dtype)


def _fold_bn(gamma, beta, mean, var):
    scale = gamma / jnp.sqrt(var + _BN_EPS)
    shift = beta - mean * scale
    return scale.astype(jnp.float32), shift.astype(jnp.float32)


def _round_up(v, m):
    return (v + m - 1) // m * m


def _pad_axis(a, size, axis):
    if a.shape[axis] == size:
        return a
    widths = [(0, 0)] * a.ndim
    widths[axis] = (0, size - a.shape[axis])
    return jnp.pad(a, widths)


def _boundary_masks(tb, h, w):
    idx = jnp.arange(tb * h * w, dtype=jnp.int32)
    xi = idx % w
    yi = (idx // w) % h
    return jnp.stack([(xi < w - 1), (xi > 0), (yi > 0), (yi < h - 1)],
                     axis=1).astype(jnp.float32)           # (M, 4)


def leff_forward(x, params, *, batch_tile=None):
    """Pallas implementation of LocallyEnhancedFeedForward.forward (eval mode)."""
    b, n, k = x.shape
    hw = n - 1
    h = w = int(math.sqrt(hw))
    assert h * w == hw, "token count must be 1 + square"

    ch = params['w1'].shape[1]
    cout = params['w3'].shape[1]
    assert cout == k, "cls token bypasses the block, so Cout must equal Cin"

    # Batch tile: big enough to keep the MXU fed (M = TB*H*W rows), small
    # enough that f32 intermediates fit v7x's 64 MiB VMEM at real CeiT sizes,
    # and chosen so the grid has >= 2 steps (keeps double-buffering active and
    # both v7x TensorCores busy).
    if batch_tile is None:
        cands = [d for d in (4, 2, 1) if b % d == 0 and b // d >= 2]
        batch_tile = cands[0] if cands else b
    tb = batch_tile
    assert b % tb == 0
    m_rows = tb * hw
    assert m_rows % 8 == 0, "TB*H*W must be a multiple of 8 (sublane tiling)"

    # Lane-dense padded channel sizes (zero padding is exactly neutral: padded
    # lanes stay 0 through matmul/GELU/depthwise and are sliced off).
    kp = _round_up(k, _LANE)
    cp = _round_up(ch, _LANE)
    op = _round_up(cout, _LANE)

    cls_tok = x[:, :1, :]
    tokens = x[:, 1:, :].reshape(b * hw, k)

    # ---- host-side folding: BN scale -> weights, conv bias + BN shift -------
    s1, t1 = _fold_bn(params['g1'], params['be1'], params['m1'], params['v1'])
    s2, t2 = _fold_bn(params['g2'], params['be2'], params['m2'], params['v2'])
    s3, t3 = _fold_bn(params['g3'], params['be3'], params['m3'], params['v3'])

    w1f = _pad_axis(_pad_axis(params['w1'] * s1[None, :], cp, 1), kp, 0).astype(jnp.bfloat16)
    b1f = _pad_axis((params['b1'] * s1 + t1)[None, :], cp, 1).astype(jnp.float32)
    dwf = _pad_axis(params['dw'].reshape(9, ch) * s2[None, :], cp, 1).astype(jnp.float32)
    b2f = _pad_axis((params['b2'] * s2 + t2)[None, :], cp, 1).astype(jnp.float32)
    w3f = _pad_axis(_pad_axis(params['w3'] * s3[None, :], op, 1), cp, 0).astype(jnp.bfloat16)
    b3f = _pad_axis((params['b3'] * s3 + t3)[None, :], op, 1).astype(jnp.float32)

    tokens_p = _pad_axis(tokens.astype(jnp.bfloat16), kp, 1)   # cast before pad
    masks = _boundary_masks(tb, h, w)                          # (M, 4), constant

    # Rough per-step VMEM need (double-buffered tiles + weights + live f32
    # intermediates) -> explicit scoped-VMEM limit with 2x headroom, capped at
    # v7x's 64 MiB physical VMEM, floored at the 32 MiB default.
    est = (
        2 * 2 * m_rows * kp * 2                               # input tile bf16 x2
        + 2 * 2 * m_rows * op * 2                             # output tile bf16 x2
        + 2 * 2 * (kp * cp + cp * op)                         # 1x1 weights bf16 x2
        + 2 * 4 * (9 * cp + 2 * cp + op + 4 * m_rows)         # small f32 consts
        + m_rows * cp * 4                                     # h (f32)
        + 14 * m_rows * _LANE * 4                             # per-chunk temps
        + 2 * m_rows * op * 4                                 # conv3 acc + cast
    )
    vmem_limit = int(min(64 << 20, max(32 << 20, 2 * est)))

    def const_spec(shape):
        return pl.BlockSpec(shape, lambda i, _s=len(shape): (0,) * _s)

    out_tokens = pl.pallas_call(
        partial(_leff_kernel, W=w),
        out_shape=jax.ShapeDtypeStruct((b * hw, op), jnp.bfloat16),
        grid=(b // tb,),
        in_specs=[
            pl.BlockSpec((m_rows, kp), lambda i: (i, 0)),     # token rows
            const_spec((m_rows, 4)),   # boundary masks (precomputed, constant)
            const_spec((kp, cp)),      # w1  (BN1-folded, bf16)
            const_spec((1, cp)),       # bias1 = b1*s1 + t1
            const_spec((9, cp)),       # depthwise weights (BN2-folded)
            const_spec((1, cp)),       # bias2 = b2*s2 + t2
            const_spec((cp, op)),      # w3  (BN3-folded, bf16)
            const_spec((1, op)),       # bias3 = b3*s3 + t3
        ],
        out_specs=pl.BlockSpec((m_rows, op), lambda i: (i, 0)),
        compiler_params=pltpu.CompilerParams(
            dimension_semantics=("parallel",),
            vmem_limit_bytes=vmem_limit),
    )(tokens_p, masks, w1f, b1f, dwf, b2f, w3f, b3f)

    out_tokens = out_tokens.reshape(b, hw, op)[:, :, :cout].astype(x.dtype)
    return jnp.concatenate([cls_tok, out_tokens], axis=1)


def leff_reference(x, params):
    """Pure-JAX reference (same math, XLA ops, f32 HIGHEST precision)."""
    b, n, k = x.shape
    hw = n - 1
    h = w = int(math.sqrt(hw))
    ch = params['w1'].shape[1]
    cls_tok, tokens = x[:, :1, :], x[:, 1:, :]
    img = tokens.reshape(b, h, w, k)                       # NHWC

    def bn(v, g, be, m, var):
        s = g / jnp.sqrt(var + _BN_EPS)
        return v * s + (be - m * s)

    hp = jax.lax.Precision.HIGHEST
    hid = jnp.einsum('bhwc,cd->bhwd', img, params['w1'], precision=hp) + params['b1']
    hid = bn(hid, params['g1'], params['be1'], params['m1'], params['v1'])
    hid = jax.nn.gelu(hid, approximate=False)

    rhs = params['dw'].reshape(3, 3, 1, ch)
    hid = jax.lax.conv_general_dilated(
        hid, rhs, window_strides=(1, 1), padding='SAME',
        dimension_numbers=('NHWC', 'HWIO', 'NHWC'),
        feature_group_count=ch, precision=hp) + params['b2']
    hid = bn(hid, params['g2'], params['be2'], params['m2'], params['v2'])
    hid = jax.nn.gelu(hid, approximate=False)

    out = jnp.einsum('bhwc,cd->bhwd', hid, params['w3'], precision=hp) + params['b3']
    out = bn(out, params['g3'], params['be3'], params['m3'], params['v3'])
    return jnp.concatenate([cls_tok, out.reshape(b, hw, -1)], axis=1)


if __name__ == "__main__":
    B, H, W = 2, 8, 8
    CIN, CHID, COUT = 16, 32, 16
    N = H * W + 1                                          # 1 cls token + 64 spatial

    key = jax.random.PRNGKey(0)
    ks = jax.random.split(key, 20)
    x = jax.random.normal(ks[0], (B, N, CIN), dtype=jnp.float32)

    def rnd(kk, shape, scale=0.1):
        return (scale * jax.random.normal(kk, shape)).astype(jnp.float32)

    params = dict(
        w1=rnd(ks[1], (CIN, CHID)), b1=rnd(ks[2], (CHID,)),
        dw=rnd(ks[3], (3, 3, CHID)), b2=rnd(ks[4], (CHID,)),
        w3=rnd(ks[5], (CHID, COUT)), b3=rnd(ks[6], (COUT,)),
        # BatchNorm (eval-mode) parameters: gamma, beta, running_mean, running_var
        g1=1.0 + rnd(ks[7], (CHID,)), be1=rnd(ks[8], (CHID,)),
        m1=rnd(ks[9], (CHID,)), v1=0.5 + jax.random.uniform(ks[10], (CHID,)),
        g2=1.0 + rnd(ks[11], (CHID,)), be2=rnd(ks[12], (CHID,)),
        m2=rnd(ks[13], (CHID,)), v2=0.5 + jax.random.uniform(ks[14], (CHID,)),
        g3=1.0 + rnd(ks[15], (COUT,)), be3=rnd(ks[16], (COUT,)),
        m3=rnd(ks[17], (COUT,)), v3=0.5 + jax.random.uniform(ks[18], (COUT,)),
    )
    params = {kk: vv.astype(jnp.float32) for kk, vv in params.items()}

    out = jax.block_until_ready(leff_forward(x, params))
    ref = jax.block_until_ready(leff_reference(x, params))

    assert out.shape == (B, N, COUT), out.shape
    err = jnp.max(jnp.abs(out - ref))
    # bf16 MXU operands + bf16 output store -> looser tolerance than pure f32.
    if not jnp.allclose(out, ref, atol=1e-2, rtol=1e-2):
        raise AssertionError(f"mismatch, max abs err = {err}")
    print("KERNEL_OK")
</pallas_src>

<mosaic_0001>
module attributes {stable_mosaic.version = 11 : i64} {
  func.func @_leff_kernel(%arg0: i32, %arg1: memref<64x128xbf16, #tpu.memory_space<vmem>>, %arg2: memref<64x4xf32, #tpu.memory_space<vmem>>, %arg3: memref<128x128xbf16, #tpu.memory_space<vmem>>, %arg4: memref<1x128xf32, #tpu.memory_space<vmem>>, %arg5: memref<9x128xf32, #tpu.memory_space<vmem>>, %arg6: memref<1x128xf32, #tpu.memory_space<vmem>>, %arg7: memref<128x128xbf16, #tpu.memory_space<vmem>>, %arg8: memref<1x128xf32, #tpu.memory_space<vmem>>, %arg9: memref<64x128xbf16, #tpu.memory_space<vmem>>) attributes {dimension_semantics = [#tpu.dimension_semantics<parallel>], iteration_bounds = array<i64: 2>, scalar_prefetch = 0 : i64, scratch_operands = 0 : i64, tpu.core_type = #tpu.core_type<tc>, window_params = [{transform_indices = @transform_0, window_bounds = array<i64: 64, 128>}, {pipeline_mode = #tpu.pipeline_mode<synchronous>, transform_indices = @transform_1, window_bounds = array<i64: 64, 4>}, {pipeline_mode = #tpu.pipeline_mode<synchronous>, transform_indices = @transform_2, window_bounds = array<i64: 128, 128>}, {pipeline_mode = #tpu.pipeline_mode<synchronous>, transform_indices = @transform_3, window_bounds = array<i64: 1, 128>}, {pipeline_mode = #tpu.pipeline_mode<synchronous>, transform_indices = @transform_4, window_bounds = array<i64: 9, 128>}, {pipeline_mode = #tpu.pipeline_mode<synchronous>, transform_indices = @transform_5, window_bounds = array<i64: 1, 128>}, {pipeline_mode = #tpu.pipeline_mode<synchronous>, transform_indices = @transform_6, window_bounds = array<i64: 128, 128>}, {pipeline_mode = #tpu.pipeline_mode<synchronous>, transform_indices = @transform_7, window_bounds = array<i64: 1, 128>}, {transform_indices = @transform_8, window_bounds = array<i64: 64, 128>}]} {
    %c0 = arith.constant 0 : index
    %c0_0 = arith.constant 0 : index
    %0 = vector.load %arg1[%c0, %c0_0] : memref<64x128xbf16, #tpu.memory_space<vmem>>, vector<64x128xbf16>
    %c0_1 = arith.constant 0 : index
    %c0_2 = arith.constant 0 : index
    %1 = vector.load %arg3[%c0_1, %c0_2] : memref<128x128xbf16, #tpu.memory_space<vmem>>, vector<128x128xbf16>
    %cst = arith.constant dense<0.000000e+00> : vector<64x128xf32>
    %2 = tpu.matmul %0, %1, %cst {dimension_numbers = #tpu.dot_dimension_numbers<[1], [0], [0], [1], [0, 0, 1, 1], [], []>} : vector<64x128xbf16>, vector<128x128xbf16>, vector<64x128xf32> -> vector<64x128xf32>
    %c0_3 = arith.constant 0 : index
    %c0_4 = arith.constant 0 : index
    %3 = vector.load %arg4[%c0_3, %c0_4] : memref<1x128xf32, #tpu.memory_space<vmem>>, vector<1x128xf32>
    %4 = vector.broadcast %3 : vector<1x128xf32> to vector<64x128xf32>
    %5 = arith.addf %2, %4 : vector<64x128xf32>
    %cst_5 = arith.constant 0.707106769 : f32
    %6 = vector.broadcast %cst_5 : f32 to vector<64x128xf32>
    %7 = arith.mulf %5, %6 : vector<64x128xf32>
    %8 = math.absf %7 : vector<64x128xf32>
    %cst_6 = arith.constant 0.327591091 : f32
    %9 = vector.broadcast %cst_6 : f32 to vector<64x128xf32>
    %10 = arith.mulf %9, %8 : vector<64x128xf32>
    %cst_7 = arith.constant 1.000000e+00 : f32
    %11 = vector.broadcast %cst_7 : f32 to vector<64x128xf32>
    %12 = arith.addf %11, %10 : vector<64x128xf32>
    %13 = tpu.reciprocal %12 {approx = true} : vector<64x128xf32> -> vector<64x128xf32>
    %cst_8 = arith.constant 1.06140542 : f32
    %14 = vector.broadcast %cst_8 : f32 to vector<64x128xf32>
    %15 = arith.mulf %14, %13 : vector<64x128xf32>
    %cst_9 = arith.constant -1.45315206 : f32
    %16 = vector.broadcast %cst_9 : f32 to vector<64x128xf32>
    %17 = arith.addf %15, %16 : vector<64x128xf32>
    %18 = arith.mulf %17, %13 : vector<64x128xf32>
    %cst_10 = arith.constant 1.42141378 : f32
    %19 = vector.broadcast %cst_10 : f32 to vector<64x128xf32>
    %20 = arith.addf %18, %19 : vector<64x128xf32>
    %21 = arith.mulf %20, %13 : vector<64x128xf32>
    %cst_11 = arith.constant -0.284496725 : f32
    %22 = vector.broadcast %cst_11 : f32 to vector<64x128xf32>
    %23 = arith.addf %21, %22 : vector<64x128xf32>
    %24 = arith.mulf %23, %13 : vector<64x128xf32>
    %cst_12 = arith.constant 0.254829586 : f32
    %25 = vector.broadcast %cst_12 : f32 to vector<64x128xf32>
    %26 = arith.addf %24, %25 : vector<64x128xf32>
    %27 = arith.mulf %26, %13 : vector<64x128xf32>
    %cst_13 = arith.constant 0.000000e+00 : f32
    %28 = vector.broadcast %cst_13 : f32 to vector<64x128xf32>
    %29 = arith.subf %28, %8 : vector<64x128xf32>
    %30 = arith.mulf %29, %8 : vector<64x128xf32>
    %31 = math.exp %30 : vector<64x128xf32>
    %32 = arith.mulf %27, %31 : vector<64x128xf32>
    %cst_14 = arith.constant 1.000000e+00 : f32
    %33 = vector.broadcast %cst_14 : f32 to vector<64x128xf32>
    %34 = arith.subf %33, %32 : vector<64x128xf32>
    %cst_15 = arith.constant 0.000000e+00 : f32
    %35 = vector.broadcast %cst_15 : f32 to vector<64x128xf32>
    %36 = arith.cmpf oge, %7, %35 : vector<64x128xf32>
    %cst_16 = arith.constant 0.000000e+00 : f32
    %37 = vector.broadcast %cst_16 : f32 to vector<64x128xf32>
    %38 = arith.subf %37, %34 : vector<64x128xf32>
    %39 = arith.select %36, %34, %38 : vector<64x128xi1>, vector<64x128xf32>
    %cst_17 = arith.constant 5.000000e-01 : f32
    %40 = vector.broadcast %cst_17 : f32 to vector<64x128xf32>
    %41 = arith.mulf %40, %5 : vector<64x128xf32>
    %cst_18 = arith.constant 1.000000e+00 : f32
    %42 = vector.broadcast %cst_18 : f32 to vector<64x128xf32>
    %43 = arith.addf %42, %39 : vector<64x128xf32>
    %44 = arith.mulf %41, %43 : vector<64x128xf32>
    %c0_19 = arith.constant 0 : index
    %c0_20 = arith.constant 0 : index
    %45 = vector.load %arg2[%c0_19, %c0_20] : memref<64x4xf32, #tpu.memory_space<vmem>>, vector<64x4xf32>
    %46 = vector.extract_strided_slice %45 {offsets = [0, 0], sizes = [64, 1], strides = [1, 1]} : vector<64x4xf32> to vector<64x1xf32>
    %47 = vector.extract_strided_slice %45 {offsets = [0, 1], sizes = [64, 1], strides = [1, 1]} : vector<64x4xf32> to vector<64x1xf32>
    %48 = vector.extract_strided_slice %45 {offsets = [0, 2], sizes = [64, 1], strides = [1, 1]} : vector<64x4xf32> to vector<64x1xf32>
    %49 = vector.extract_strided_slice %45 {offsets = [0, 3], sizes = [64, 1], strides = [1, 1]} : vector<64x4xf32> to vector<64x1xf32>
    %c0_21 = arith.constant 0 : index
    %c0_22 = arith.constant 0 : index
    %50 = vector.load %arg5[%c0_21, %c0_22] : memref<9x128xf32, #tpu.memory_space<vmem>>, vector<9x128xf32>
    %c0_23 = arith.constant 0 : index
    %c0_24 = arith.constant 0 : index
    %51 = vector.load %arg6[%c0_23, %c0_24] : memref<1x128xf32, #tpu.memory_space<vmem>>, vector<1x128xf32>
    %52 = vector.broadcast %46 : vector<64x1xf32> to vector<64x128xf32>
    %53 = arith.mulf %44, %52 : vector<64x128xf32>
    %c1_i32 = arith.constant 1 : i32
    %54 = tpu.dynamic_rotate %53 by %c1_i32 dim 0 : vector<64x128xf32>, i32 -> vector<64x128xf32>
    %55 = vector.broadcast %47 : vector<64x1xf32> to vector<64x128xf32>
    %56 = arith.mulf %44, %55 : vector<64x128xf32>
    %c63_i32 = arith.constant 63 : i32
    %57 = tpu.dynamic_rotate %56 by %c63_i32 dim 0 : vector<64x128xf32>, i32 -> vector<64x128xf32>
    %58 = vector.extract_strided_slice %50 {offsets = [0, 0], sizes = [1, 128], strides = [1, 1]} : vector<9x128xf32> to vector<1x128xf32>
    %59 = vector.broadcast %58 : vector<1x128xf32> to vector<64x128xf32>
    %60 = arith.mulf %59, %54 : vector<64x128xf32>
    %61 = vector.extract_strided_slice %50 {offsets = [1, 0], sizes = [1, 128], strides = [1, 1]} : vector<9x128xf32> to vector<1x128xf32>
    %62 = vector.broadcast %61 : vector<1x128xf32> to vector<64x128xf32>
    %63 = arith.mulf %62, %44 : vector<64x128xf32>
    %64 = arith.addf %60, %63 : vector<64x128xf32>
    %65 = vector.extract_strided_slice %50 {offsets = [2, 0], sizes = [1, 128], strides = [1, 1]} : vector<9x128xf32> to vector<1x128xf32>
    %66 = vector.broadcast %65 : vector<1x128xf32> to vector<64x128xf32>
    %67 = arith.mulf %66, %57 : vector<64x128xf32>
    %68 = arith.addf %64, %67 : vector<64x128xf32>
    %69 = vector.extract_strided_slice %50 {offsets = [3, 0], sizes = [1, 128], strides = [1, 1]} : vector<9x128xf32> to vector<1x128xf32>
    %70 = vector.broadcast %69 : vector<1x128xf32> to vector<64x128xf32>
    %71 = arith.mulf %70, %54 : vector<64x128xf32>
    %72 = vector.extract_strided_slice %50 {offsets = [4, 0], sizes = [1, 128], strides = [1, 1]} : vector<9x128xf32> to vector<1x128xf32>
    %73 = vector.broadcast %72 : vector<1x128xf32> to vector<64x128xf32>
    %74 = arith.mulf %73, %44 : vector<64x128xf32>
    %75 = arith.addf %71, %74 : vector<64x128xf32>
    %76 = vector.extract_strided_slice %50 {offsets = [5, 0], sizes = [1, 128], strides = [1, 1]} : vector<9x128xf32> to vector<1x128xf32>
    %77 = vector.broadcast %76 : vector<1x128xf32> to vector<64x128xf32>
    %78 = arith.mulf %77, %57 : vector<64x128xf32>
    %79 = arith.addf %75, %78 : vector<64x128xf32>
    %80 = vector.extract_strided_slice %50 {offsets = [6, 0], sizes = [1, 128], strides = [1, 1]} : vector<9x128xf32> to vector<1x128xf32>
    %81 = vector.broadcast %80 : vector<1x128xf32> to vector<64x128xf32>
    %82 = arith.mulf %81, %54 : vector<64x128xf32>
    %83 = vector.extract_strided_slice %50 {offsets = [7, 0], sizes = [1, 128], strides = [1, 1]} : vector<9x128xf32> to vector<1x128xf32>
    %84 = vector.broadcast %83 : vector<1x128xf32> to vector<64x128xf32>
    %85 = arith.mulf %84, %44 : vector<64x128xf32>
    %86 = arith.addf %82, %85 : vector<64x128xf32>
    %87 = vector.extract_strided_slice %50 {offsets = [8, 0], sizes = [1, 128], strides = [1, 1]} : vector<9x128xf32> to vector<1x128xf32>
    %88 = vector.broadcast %87 : vector<1x128xf32> to vector<64x128xf32>
    %89 = arith.mulf %88, %57 : vector<64x128xf32>
    %90 = arith.addf %86, %89 : vector<64x128xf32>
    %c8_i32 = arith.constant 8 : i32
    %91 = tpu.dynamic_rotate %68 by %c8_i32 dim 0 : vector<64x128xf32>, i32 -> vector<64x128xf32>
    %92 = vector.broadcast %48 : vector<64x1xf32> to vector<64x128xf32>
    %93 = arith.mulf %92, %91 : vector<64x128xf32>
    %94 = arith.addf %79, %93 : vector<64x128xf32>
    %c56_i32 = arith.constant 56 : i32
    %95 = tpu.dynamic_rotate %90 by %c56_i32 dim 0 : vector<64x128xf32>, i32 -> vector<64x128xf32>
    %96 = vector.broadcast %49 : vector<64x1xf32> to vector<64x128xf32>
    %97 = arith.mulf %96, %95 : vector<64x128xf32>
    %98 = arith.addf %94, %97 : vector<64x128xf32>
    %99 = vector.broadcast %51 : vector<1x128xf32> to vector<64x128xf32>
    %100 = arith.addf %98, %99 : vector<64x128xf32>
    %cst_25 = arith.constant 0.707106769 : f32
    %101 = vector.broadcast %cst_25 : f32 to vector<64x128xf32>
    %102 = arith.mulf %100, %101 : vector<64x128xf32>
    %103 = math.absf %102 : vector<64x128xf32>
    %cst_26 = arith.constant 0.327591091 : f32
    %104 = vector.broadcast %cst_26 : f32 to vector<64x128xf32>
    %105 = arith.mulf %104, %103 : vector<64x128xf32>
    %cst_27 = arith.constant 1.000000e+00 : f32
    %106 = vector.broadcast %cst_27 : f32 to vector<64x128xf32>
    %107 = arith.addf %106, %105 : vector<64x128xf32>
    %108 = tpu.reciprocal %107 {approx = true} : vector<64x128xf32> -> vector<64x128xf32>
    %cst_28 = arith.constant 1.06140542 : f32
    %109 = vector.broadcast %cst_28 : f32 to vector<64x128xf32>
    %110 = arith.mulf %109, %108 : vector<64x128xf32>
    %cst_29 = arith.constant -1.45315206 : f32
    %111 = vector.broadcast %cst_29 : f32 to vector<64x128xf32>
    %112 = arith.addf %110, %111 : vector<64x128xf32>
    %113 = arith.mulf %112, %108 : vector<64x128xf32>
    %cst_30 = arith.constant 1.42141378 : f32
    %114 = vector.broadcast %cst_30 : f32 to vector<64x128xf32>
    %115 = arith.addf %113, %114 : vector<64x128xf32>
    %116 = arith.mulf %115, %108 : vector<64x128xf32>
    %cst_31 = arith.constant -0.284496725 : f32
    %117 = vector.broadcast %cst_31 : f32 to vector<64x128xf32>
    %118 = arith.addf %116, %117 : vector<64x128xf32>
    %119 = arith.mulf %118, %108 : vector<64x128xf32>
    %cst_32 = arith.constant 0.254829586 : f32
    %120 = vector.broadcast %cst_32 : f32 to vector<64x128xf32>
    %121 = arith.addf %119, %120 : vector<64x128xf32>
    %122 = arith.mulf %121, %108 : vector<64x128xf32>
    %cst_33 = arith.constant 0.000000e+00 : f32
    %123 = vector.broadcast %cst_33 : f32 to vector<64x128xf32>
    %124 = arith.subf %123, %103 : vector<64x128xf32>
    %125 = arith.mulf %124, %103 : vector<64x128xf32>
    %126 = math.exp %125 : vector<64x128xf32>
    %127 = arith.mulf %122, %126 : vector<64x128xf32>
    %cst_34 = arith.constant 1.000000e+00 : f32
    %128 = vector.broadcast %cst_34 : f32 to vector<64x128xf32>
    %129 = arith.subf %128, %127 : vector<64x128xf32>
    %cst_35 = arith.constant 0.000000e+00 : f32
    %130 = vector.broadcast %cst_35 : f32 to vector<64x128xf32>
    %131 = arith.cmpf oge, %102, %130 : vector<64x128xf32>
    %cst_36 = arith.constant 0.000000e+00 : f32
    %132 = vector.broadcast %cst_36 : f32 to vector<64x128xf32>
    %133 = arith.subf %132, %129 : vector<64x128xf32>
    %134 = arith.select %131, %129, %133 : vector<64x128xi1>, vector<64x128xf32>
    %cst_37 = arith.constant 5.000000e-01 : f32
    %135 = vector.broadcast %cst_37 : f32 to vector<64x128xf32>
    %136 = arith.mulf %135, %100 : vector<64x128xf32>
    %cst_38 = arith.constant 1.000000e+00 : f32
    %137 = vector.broadcast %cst_38 : f32 to vector<64x128xf32>
    %138 = arith.addf %137, %134 : vector<64x128xf32>
    %139 = arith.mulf %136, %138 : vector<64x128xf32>
    %140 = arith.truncf %139 : vector<64x128xf32> to vector<64x128xbf16>
    %c0_39 = arith.constant 0 : index
    %c0_40 = arith.constant 0 : index
    %141 = vector.load %arg7[%c0_39, %c0_40] : memref<128x128xbf16, #tpu.memory_space<vmem>>, vector<128x128xbf16>
    %cst_41 = arith.constant dense<0.000000e+00> : vector<64x128xf32>
    %142 = tpu.matmul %140, %141, %cst_41 {dimension_numbers = #tpu.dot_dimension_numbers<[1], [0], [0], [1], [0, 0, 1, 1], [], []>} : vector<64x128xbf16>, vector<128x128xbf16>, vector<64x128xf32> -> vector<64x128xf32>
    %c0_42 = arith.constant 0 : index
    %c0_43 = arith.constant 0 : index
    %143 = vector.load %arg8[%c0_42, %c0_43] : memref<1x128xf32, #tpu.memory_space<vmem>>, vector<1x128xf32>
    %144 = vector.broadcast %143 : vector<1x128xf32> to vector<64x128xf32>
    %145 = arith.addf %142, %144 : vector<64x128xf32>
    %146 = arith.truncf %145 : vector<64x128xf32> to vector<64x128xbf16>
    %c0_44 = arith.constant 0 : index
    %c0_45 = arith.constant 0 : index
    %147 = vector.load %arg9[%c0_44, %c0_45] : memref<64x128xbf16, #tpu.memory_space<vmem>>, vector<64x128xbf16>
    tpu.vector_store %arg9[%c0_44, %c0_45], %146 {strides = array<i32>} : memref<64x128xbf16, #tpu.memory_space<vmem>>, vector<64x128xbf16>,
    return
  }
  func.func @transform_0(%arg0: i32) -> (i32, i32) {
    %c0_i32 = arith.constant 0 : i32
    %c0_i32_0 = arith.constant 0 : i32
    return %arg0, %c0_i32 : i32, i32
  }
  func.func @transform_1(%arg0: i32) -> (i32, i32) {
    %c0_i32 = arith.constant 0 : i32
    %c0_i32_0 = arith.constant 0 : i32
    %c0_i32_1 = arith.constant 0 : i32
    return %c0_i32, %c0_i32_0 : i32, i32
  }
  func.func @transform_2(%arg0: i32) -> (i32, i32) {
    %c0_i32 = arith.constant 0 : i32
    %c0_i32_0 = arith.constant 0 : i32
    %c0_i32_1 = arith.constant 0 : i32
    return %c0_i32, %c0_i32_0 : i32, i32
  }
  func.func @transform_3(%arg0: i32) -> (i32, i32) {
    %c0_i32 = arith.constant 0 : i32
    %c0_i32_0 = arith.constant 0 : i32
    %c0_i32_1 = arith.constant 0 : i32
    return %c0_i32, %c0_i32_0 : i32, i32
  }
  func.func @transform_4(%arg0: i32) -> (i32, i32) {
    %c0_i32 = arith.constant 0 : i32
    %c0_i32_0 = arith.constant 0 : i32
    %c0_i32_1 = arith.constant 0 : i32
    return %c0_i32, %c0_i32_0 : i32, i32
  }
  func.func @transform_5(%arg0: i32) -> (i32, i32) {
    %c0_i32 = arith.constant 0 : i32
    %c0_i32_0 = arith.constant 0 : i32
    %c0_i32_1 = arith.constant 0 : i32
    return %c0_i32, %c0_i32_0 : i32, i32
  }
  func.func @transform_6(%arg0: i32) -> (i32, i32) {
    %c0_i32 = arith.constant 0 : i32
    %c0_i32_0 = arith.constant 0 : i32
    %c0_i32_1 = arith.constant 0 : i32
    return %c0_i32, %c0_i32_0 : i32, i32
  }
  func.func @transform_7(%arg0: i32) -> (i32, i32) {
    %c0_i32 = arith.constant 0 : i32
    %c0_i32_0 = arith.constant 0 : i32
    %c0_i32_1 = arith.constant 0 : i32
    return %c0_i32, %c0_i32_0 : i32, i32
  }
  func.func @transform_8(%arg0: i32) -> (i32, i32) {
    %c0_i32 = arith.constant 0 : i32
    %c0_i32_0 = arith.constant 0 : i32
    return %arg0, %c0_i32 : i32, i32
  }
}

</mosaic_0001>

<bundles_post_ra>
// kernel: tpu_custom_call.1
= control target key start
LH: loop header
LB: loop body
LE: loop exit
PB: predicated region body
PF: predicated region fallthrough
CT: control target
= control target key end

     0   :  { %13 = vsyncpa [#allocation3], 0  ;;  %s3031_s0 = inlined_call_operand.vmem [shape: bf16[128,128], index: 0, kind: input, shape index: {}]   ;;  %s3032_s1 = inlined_call_operand.vmem [shape: f32[64,4], index: 1, kind: input, shape index: {}]   ;;  %s3033_s2 = inlined_call_operand.hbm [shape: bf16[128,128], index: 2, kind: input, shape index: {}]   ;;  %s3034_s3 = inlined_call_operand.vmem [shape: f32[1,128], index: 3, kind: input, shape index: {}]   ;;  %s3035_s4 = inlined_call_operand.vmem [shape: f32[9,128], index: 4, kind: input, shape index: {}]   ;;  %s3036_s5 = inlined_call_operand.vmem [shape: f32[1,128], index: 5, kind: input, shape index: {}]   ;;  %s3037_s6 = inlined_call_operand.hbm [shape: bf16[128,128], index: 6, kind: input, shape index: {}]   ;;  %s3038_s7 = inlined_call_operand.vmem [shape: f32[1,128], index: 7, kind: input, shape index: {}]   ;;  %s3039_s8 = inlined_call_operand.hbm [shape: bf16[128,128], index: 8, kind: output, shape index: {}]  }
   0x1   :  { %14 = vsyncpa [#allocation6], 0 }
   0x2   :  { %15 = vsyncpa [#allocation4], 0 }
   0x3   :  { %17 = vsyncpa [#allocation4 + $0x1], 0  ;;  %s2102_s27 = smov 0   ;;  %s2104_s28 = smov 0  }
   0x4   :  { %s2106_s29 = smov 0   ;;  %s2108_s30 = smov 0  }
   0x5 LB: > { %3044 = sst [smem:[#allocation11_spill]] %s2040_s29  ;;  %s2123_s9 = sadd.s32 4294967295, %s2044_s30   ;;  %s2044_s30 = sphi %s2108_s30, %s3061_s30   ;;  %s2040_s29 = sphi %s2106_s29, %s3058_s29   ;;  %s2036_s28 = sphi %s2104_s28, %s3060_s28   ;;  %s2032_s27 = sphi %s2102_s27, %s3059_s27  }
   0x6   : > { %s1601_s10 = sadd.s32 4294967294, %s2044_s30   ;;  %s2127_s11 = sadd.s32 1, %s2044_s30  }
   0x7   : > { %s203_s12 = sadd.s32 1, %s2040_s29  ;;  %s200_s13 = ssub.s32 %s2044_s30, %s2127_s11 }
   0x8   : > { %p213_p0 = scmp.ne.s32.totalorder %s2040_s29, %s2036_s28  ;;  %p201_p1 = scmp.eq.s32.totalorder %s200_s13, 0 }
   0x9   : > { %p214_p2 = scmp.eq.s32.totalorder %s2123_s9, 1  ;;  %p219_p3 = scmp.ne.s32.totalorder %s2036_s28, %s2032_s27 }
   0xa   : > { %p220_p4 = scmp.eq.s32.totalorder %s1601_s10, 1  ;;  %p1602_p7 = scmp.ge.s32.totalorder %s2044_s30, 1 }
   0xb   : > { %s2138_s14 = scalar_select %p201_p1, %s2040_s29, %s203_s12  }
   0xc   : > { %p2140_p5 = por %p214_p2, %p213_p0  ;;  %p2144_p6 = por %p220_p4, %p219_p3 }
   0xd   : > { %3045 = sst [smem:[#allocation12_spill]] %s2138_s14  ;;  %p227_p8 = scmp.lt.s32.totalorder %s2044_s30, 3 }
   0xe   : > { %s3046_s15 = scalar_select %p2140_p5, 1, 0 }
   0xf   : > { %s3047_s16 = scalar_select %p2144_p6, 1, 0 }
  0x10   : > { %p3040_p9 = scmp.eq.s32.totalorder %s2123_s9, 0  ;;  %p2151_p10 = pnand %p1602_p7, %p227_p8 }
  0x11   : > { %s2046_s18 = smov [#allocation2]   ;;  %s2047_s21 = smov [#allocation5]  }
  0x12   : > { %s3048_s17 = scalar_select %p2151_p10, 1, 0 }
  0x13   : > { %s242_s19 = sshll.u32 %s2046_s18, 4  ;;  %p1763_p11 = pneg %p2151_p10  ;;  %s243_s19 = int_to_ptr.vmem [resolvable:$true] %s242_s19 }
  0x14   : > { %s264_s22 = sshll.u32 %s2047_s21, 4  ;;  %s1918_s25 = scalar_lea.hbm %s3033_s2, 1024  ;;  %s2163_s22 = int_to_ptr.vmem [resolvable:$true] %s264_s22 }
  0x15   : > { %p2159_p12 = pnand %p3040_p9, %p1763_p11  ;;  %p1919_p13 = scmp.ne.s32.totalorder %s3033_s2, %s1918_s25 }
  0x16   : > { %p1925_p3 = scmp.lt.u32.totalorder %s1918_s25, %s3033_s2 }
  0x17   : > { %p1920_p0 = pneg %p2159_p12 }
  0x19   : > { %p1921_p1 = pnand %p1920_p0, %p1919_p13 }
  0x1b   : > { %p1922_p2 = pneg %p1921_p1 }
  0x1d   : > { %p1927_p4 = pnand %p1925_p3, %p1922_p2 }
  0x1f   : > { %1930 = shalt.err (!%p1927_p4)
}
  0x20   : > { %s1931_s18 = scalar_lea.vmem %s243_s19, 1024  ;;  %p1939_p9 = scmp.lt.s32.totalorder %s243_s19, %s243_s19 }
  0x21   : > { %p1932_p7 = scmp.ne.s32.totalorder %s243_s19, %s1931_s18  ;;  %p1940_p6 = scmp.lt.s32.totalorder %s1931_s18, %s1931_s18 }
  0x23   : > { %p1934_p8 = pnand %p1932_p7, %p1920_p0  ;;  %p1941_p5 = por %p1940_p6, %p1939_p9 }
  0x25   : > { %p1935_p11 = pneg %p1934_p8 }
  0x27   : > { %p1942_p10 = pnand %p1941_p5, %p1935_p11 }
  0x29   : > { %1945 = shalt.err (!%p1942_p10)
}
  0x2a   : > { %s2048_s21 = smov 64   ;;  %s2049_s23 = smov 4  }
  0x2b   : > { %1766 = dma.hbm_to_vmem [thread:$0]  (!%p2159_p12), %s3033_s2, 1024, %s243_s19, [#allocation3], %s2048_s21, %s2048_s21, %s2049_s23  }
  0x2c   : > { %s1946_s12 = scalar_lea.hbm %s3037_s6, 1024 }
  0x2d   : > { %p1947_p13 = scmp.ne.s32.totalorder %s3037_s6, %s1946_s12  ;;  %p1953_p9 = scmp.lt.u32.totalorder %s1946_s12, %s3037_s6 }
  0x2f   : > { %p1949_p5 = pnand %p1947_p13, %p1920_p0 }
  0x31   : > { %p1950_p6 = pneg %p1949_p5 }
  0x33   : > { %p1955_p10 = pnand %p1953_p9, %p1950_p6 }
  0x35   : > { %1958 = shalt.err (!%p1955_p10)
}
  0x36   : > { %s1959_s19 = scalar_lea.vmem %s2163_s22, 1024  ;;  %p1967_p4 = scmp.lt.s32.totalorder %s2163_s22, %s2163_s22 }
  0x37   : > { %p1960_p1 = scmp.ne.s32.totalorder %s2163_s22, %s1959_s19  ;;  %p1968_p7 = scmp.lt.s32.totalorder %s1959_s19, %s1959_s19 }
  0x39   : > { %p1962_p2 = pnand %p1960_p1, %p1920_p0  ;;  %p1969_p8 = por %p1968_p7, %p1967_p4 }
  0x3b   : > { %p1963_p3 = pneg %p1962_p2 }
  0x3d   : > { %p1970_p11 = pnand %p1969_p8, %p1963_p3 }
  0x3f   : > { %1973 = shalt.err (!%p1970_p11)
}
  0x40   : > { %1769 = dma.hbm_to_vmem [thread:$0]  (!%p2159_p12), %s3037_s6, 1024, %s2163_s22, [#allocation6], %s2048_s21, %s2048_s21, %s2049_s23  }
  0x41   : > { %p3050_p13 = scmp.ne.s32.totalorder %s3048_s17, 0 }
  0x42   : > { %p3051_p5 = scmp.eq.s32.totalorder (!%p3050_p13), %s2123_s9, 0 }
  0x43   : > { %292 = sbr.rel (%p3050_p13) target bundleno = 733 (0x2dd), region = 52 }
  0x4a   : > { %2019 = dma.done.wait (%p3051_p5), [#allocation3], 1024   ;;  %p3052_p0 = pmov %p3051_p5 }
  0x4c   : > { %2021 = vsyncadd (%p3052_p0), [#allocation3], 4294966272  ;;  %p3053_p6 = pmov %p3052_p0 }
  0x4d   : > { %p3054_p9 = pmov %p3052_p0 }
  0x4e   : > { %2023 = dma.done.wait (%p3053_p6), [#allocation6], 1024  }
  0x4f   : > { %2025 = vsyncadd (%p3054_p9), [#allocation6], 4294966272  ;;  %s1610_s20 = sshll.u32 %s2123_s9, 3  ;;  %v2050_v0 = vmov 0   ;;  %v1834_v1 = vld [vmem:[#allocation2] sm:$0xff]   ;;  %v1835_v2 = vld [vmem:[#allocation2 + $0x8] sm:$0xff]   ;;  %v781_v25 = vlaneseq }
  0x50   : > { %p331_p10 = scmp.lt.s32.totalorder %s1610_s20, 15  ;;  %1822 = vset.pattern.permute.xlu1 %v2050_v0  ;;  %1821 = vset.pattern.permute.xlu0 %v2050_v0  ;;  %v1836_v3 = vld [vmem:[#allocation2 + $0x10] sm:$0xff]   ;;  %v1837_v4 = vld [vmem:[#allocation2 + $0x18] sm:$0xff]   ;;  %v1838_v6 = vld [vmem:[#allocation2 + $0x20] sm:$0xff]   ;;  %v2051_v14 = vmov 1   ;;  %v2052_v22 = vmov 2  }
  0x51   : > { %1705 = vmatprep.subr.bf16.mxu0 %v1834_v1  ;;  %v2234_v7 = vld [vmem:[%s3032_s1 + $0x38] sm:$0xff]  ;;  %v714_v8 = vld [vmem:[%s3032_s1] sm:$0xff]  ;;  %v1839_v9 = vld [vmem:[#allocation2 + $0x28] sm:$0xff]   ;;  %v2053_v23 = vmov 3   ;;  %v2281_v31 = vshrl.u32 %v781_v25, 7  ;;  %s327_s14 = sand.u32 1, %s2036_s28  }
  0x52   : > { %s3063_s20 = smov (!%p331_p10, %s1610_s20), 15  ;;  %1706 = vmatpush3.bf16.msra.mxu0 %v1834_v1  ;;  %762 = vperm.xlu1 %1822, %v2234_v7   ;;  %v715_v10 = vld [vmem:[%s3032_s1 + $0x8] sm:$0xff]  ;;  %v2246_v11 = vld [vmem:[%s3032_s1 + $0x30] sm:$0xff]  ;;  %v718_v15 = vld [vmem:[%s3032_s1 + $0x20] sm:$0xff]  ;;  %s1609_s22 = sshll.u32 %s327_s14, 5 }
  0x53   : > { %s1611_s17 = sshll.u32 %s3063_s20, 2  ;;  %1707 = vmatprep.subr.bf16.mxu0 %v1835_v2  ;;  %727 = vperm.xlu0 %1821, %v714_v8   ;;  %v1840_v12 = vld [vmem:[#allocation2 + $0x30] sm:$0xff]   ;;  %v1841_v16 = vld [vmem:[#allocation2 + $0x38] sm:$0xff]   ;;  %v719_v21 = vld [vmem:[%s3032_s1 + $0x28] sm:$0xff]  ;;  %v863_v41 = vsub.s32 1, %v2281_v31  ;;  %v915_v45 = vsub.s32 4, %v2281_v31 }
  0x54   : > { %s2228_s23 = scalar_lea.vmem %s3031_s0, %s1611_s17  ;;  %v716_v13 = vld [vmem:[%s3032_s1 + $0x10] sm:$0xff]  ;;  %v717_v17 = vld [vmem:[%s3032_s1 + $0x18] sm:$0xff]  ;;  %v2275_v24 = vld [vmem:[%s3034_s3] ss:$0 sm:$0xff]  ;;  %v903_v48 = vsub.s32 3, %v2281_v31  ;;  %v851_v49 = vsub.s32 0, %v2281_v31 }
  0x55   : > { %v1842_v5 = vld [vmem:[%s2228_s23] sm:$0xff]   ;;  %v1843_v18 = vld [vmem:[%s2228_s23 + $0x8] sm:$0xff]   ;;  %v1844_v19 = vld [vmem:[%s2228_s23 + $0x10] sm:$0xff]   ;;  %v883_v53 = vsub.s32 2, %v2281_v31  ;;  %v935_v54 = vsub.s32 5, %v2281_v31  ;;  %vm840_vm5 = vcmp.lt.s32.totalorder %v2281_v31, 7 }
  0x56   : > { %1708 = vmatpush3.bf16.msra.mxu0 %v1835_v2  ;;  %1721 = vmatprep.mubr.bf16.mxu0 %v1842_v5  ;;  %v1845_v20 = vld [vmem:[%s2228_s23 + $0x18] sm:$0xff]   ;;  %v722_v44 = vld [vmem:[%s3035_s4] sm:$0xff]  ;;  %v1847_v1 = vld [vmem:[#allocation5 + $0x8] sm:$0xff]   ;;  %vm783_vm7 = vcmp.lt.s32.totalorder %v2281_v31, 1  ;;  %s329_s21 = scalar_lea.vmem [#allocation7], %s1609_s22  ;;  %s1657_s25 = sshll.u32 %s2123_s9, 9 }
  0x57   : > { %1709 = vmatprep.subr.bf16.mxu0 %v1836_v3  ;;  %732 = vperm.xlu1 %1822, %v715_v10   ;;  %v1846_v59 = vld [vmem:[#allocation5] sm:$0xff]   ;;  %v2324_v63 = vrot.slane %v722_v44, %v863_v41  ;;  %v2331_v5 = vrot.slane %v722_v44, %v915_v45  ;;  %s1517_s24 = sshll.u32 %s329_s21, 4  ;;  %s2986_s10 = scalar_lea.hbm %s3039_s8, %s1657_s25  ;;  %s2981_s24 = int_to_ptr.vmem [resolvable:$true] %s1517_s24 }
  0x58   : > { %757 = vperm.xlu0 %1821, %v2246_v11   ;;  %1729 = vmatprep.subr.bf16.mxu1 %v1846_v59  ;;  %s2990_s12 = scalar_lea.sflag [#allocation4], %s327_s14  ;;  %s1974_s9 = scalar_lea.vmem %s2981_s24, 512 }
  0x59   : > { %1730 = vmatpush3.bf16.msra.mxu1 %v1846_v59  ;;  %p1975_p12 = scmp.ne.s32.totalorder %s2981_s24, %s1974_s9  ;;  %p3055_p1 = scmp.ne.s32.totalorder %s3046_s15, 0 }
  0x5a   : > { %1710 = vmatpush3.bf16.msra.mxu0 %v1836_v3  ;;  %v2327_v3 = vrot.slane %v722_v44, %v903_v48  ;;  %1731 = vmatprep.subr.bf16.mxu1 %v1847_v1  ;;  %s2054_s13 = smov [#allocation7]  }
  0x5b   : > { %1711 = vmatprep.subr.bf16.mxu0 %v1837_v4  ;;  %1823 = vset.pattern.permute.xlu1 %v2051_v14  ;;  %p1976_p2 = pnand %p1975_p12, %p3055_p1  ;;  %s1978_s18 = sshll.u32 %s2054_s13, 4  ;;  %s1979_s18 = int_to_ptr.vmem [resolvable:$false] %s1978_s18 }
  0x5c   : > { %737 = vperm.xlu0 %1821, %v716_v13   ;;  %793 = vperm.xlu1 %1823, %v714_v8   ;;  %s1980_s19 = scalar_lea.vmem %s1979_s18, 1024  ;;  %p1981_p4 = scmp.lt.s32.totalorder %s2981_s24, %s1979_s18 }
  0x5d   : > { %1732 = vmatpush3.bf16.msra.mxu1 %v1847_v1  ;;  %p1977_p3 = pneg %p1976_p2  ;;  %p1982_p7 = scmp.lt.s32.totalorder %s1980_s19, %s1974_s9 }
  0x5e   : > { %1712 = vmatpush3.bf16.msra.mxu0 %v1837_v4  ;;  %v2329_v4 = vrot.slane %v722_v44, %v851_v49 }
  0x5f   : > { %1713 = vmatprep.subr.bf16.mxu0 %v1838_v6  ;;  %p1983_p8 = por %p1982_p7, %p1981_p4 }
  0x60   : > { %747 = vperm.xlu0 %1821, %v718_v15   ;;  %821 = vperm.xlu1 %1823, %v2234_v7  }
  0x61   : > { %p1984_p11 = pnand %p1983_p8, %p1977_p3 }
  0x62   : > { %1714 = vmatpush3.bf16.msra.mxu0 %v1838_v6 }
  0x63   : > { %1715 = vmatprep.subr.bf16.mxu0 %v1839_v9 }
  0x64   : > { %1825 = vset.pattern.permute.xlu0 %v2051_v14  ;;  %1824 = vset.pattern.permute.xlu1 %v2050_v0 }
  0x65   : > { %797 = vperm.xlu0 %1825, %v715_v10   ;;  %742 = vperm.xlu1 %1824, %v717_v17  }
  0x66   : > { %1716 = vmatpush3.bf16.msra.mxu0 %v1839_v9  ;;  %v2339_v9 = vrot.slane %v722_v44, %v883_v53 }
  0x67   : > { %1717 = vmatprep.subr.bf16.mxu0 %v1840_v12 }
  0x69   : > { %809 = vperm.xlu0 %1825, %v718_v15   ;;  %1826 = vset.pattern.permute.xlu1 %v2051_v14  ;;  %v1848_v14 = vld [vmem:[#allocation5 + $0x10] sm:$0xff]  }
  0x6a   : > { %1718 = vmatpush3.bf16.msra.mxu0 %v1840_v12  ;;  %801 = vperm.xlu1 %1826, %v716_v13   ;;  %v2344_v12 = vrot.slane %v722_v44, %v935_v54 }
  0x6b   : > { %1719 = vmatprep.subr.bf16.mxu0 %v1841_v16  ;;  %1733 = vmatprep.subr.bf16.mxu1 %v1848_v14 }
  0x6c   : > { %1734 = vmatpush3.bf16.msra.mxu1 %v1848_v14 }
  0x6d   : > { %817 = vperm.xlu0 %1825, %v2246_v11  }
  0x6e   : > { %1720 = vmatpush3.bf16.msra.mxu0 %v1841_v16  ;;  %805 = vperm.xlu1 %1826, %v717_v17  }
  0x71   : > { %1722 = vmatmul.mubr.bf16.vlgmr.msra.gmra.mrb[0].mxu0 %v1843_v18  ;;  %1829 = vset.pattern.permute.xlu0 %v2052_v22 }
  0x72   : > { %1725 = vmatprep.mubr.bf16.mxu0 %v1844_v19  ;;  %1010 = vperm.xlu0 %1829, %v715_v10  }
  0x73   : > { %813 = vperm.xlu1 %1826, %v719_v21  }
  0x76   : > { %1026 = vperm.xlu0 %1829, %v719_v21  }
  0x77   : > { %1827 = vset.pattern.permute.xlu1 %v2050_v0  ;;  %v967_v0 = vsub.s32 7, %v2281_v31 }
  0x78   : > { %752 = vperm.xlu1 %1827, %v719_v21  }
  0x79   : > { %1726 = vmatmul.mubr.bf16.gmra.mrb[4].mxu0 %v1845_v20 }
  0x7a   : > { %1832 = vset.pattern.permute.xlu0 %v2053_v23 }
  0x7b   : > { %1054 = vperm.xlu0 %1832, %v714_v8  }
  0x7c   : > { %1828 = vset.pattern.permute.xlu1 %v2052_v22 }
  0x7d   : > { %1006 = vperm.xlu1 %1828, %v714_v8  }
  0x7f   : > { %1066 = vperm.xlu0 %1832, %v717_v17  }
  0x81   : > { %1014 = vperm.xlu1 %1828, %v716_v13  }
  0x83   : > { %1070 = vperm.xlu0 %1832, %v718_v15  }
  0x85   : > { %1018 = vperm.xlu1 %1828, %v717_v17   ;;  %v2353_v17 = vrot.slane %v722_v44, %v967_v0 }
  0x87   : > { %1082 = vperm.xlu0 %1832, %v2234_v7  }
  0x89   : > { %1830 = vset.pattern.permute.xlu1 %v2053_v23 }
  0x8a   : > { %1058 = vperm.xlu1 %1830, %v715_v10  }
  0x8e   : > { %1062 = vperm.xlu1 %1830, %v716_v13   ;;  %v955_v13 = vsub.s32 6, %v2281_v31 }
  0x92   : > { %1831 = vset.pattern.permute.xlu1 %v2052_v22 }
  0x93   : > { %1022 = vperm.xlu1 %1831, %v718_v15  }
  0x97   : > { %1030 = vperm.xlu1 %1831, %v2246_v11  }
  0x9b   : > { %1034 = vperm.xlu1 %1831, %v2234_v7  }
  0x9f   : > { %1833 = vset.pattern.permute.xlu1 %v2053_v23 }
  0xa0   : > { %1074 = vperm.xlu1 %1833, %v719_v21  }
  0xa4   : > { %1078 = vperm.xlu1 %1833, %v2246_v11  }
  0xd1   : > { %v2322_v60 = vpop.permute.xlu1 %762 }
  0xd6   : > { %v2364_v22 = vpop.permute.xlu1 %732 }
 0x144   : > { %v1723_v26 = vpop.f32.mrb[0].mxu0 }
 0x145   : > { %v484_v27 = vadd.f32 %v1723_v26, %v2275_v24  ;;  %v475_v28 = vpop.f32.mrb[1].mxu0 }
 0x146   : > { %v2279_v29 = vadd.f32 %v2275_v24, %v475_v28  ;;  %v1724_v30 = vpop.f32.mrb[2].mxu0 }
 0x147   : > { %v2283_v32 = vmul.f32 0.70710677, %v484_v27  ;;  %v2286_v33 = vadd.f32 %v1724_v30, %v2275_v24  ;;  %v478_v34 = vpop.f32.mrb[3].mxu0  ;;  %v2355_v18 = vmul.f32 0.5, %v484_v27 }
 0x148   : > { %v2289_v35 = vmul.f32 0.70710677, %v2279_v29  ;;  %v2292_v36 = vadd.f32 %v2275_v24, %v478_v34  ;;  %v2371_v34 = vrot.slane %v722_v44, %v955_v13 }
 0x149   : > { %v516_v37 = vand.u32 2147483647, %v2283_v32  ;;  %v2296_v38 = vmul.f32 0.70710677, %v2286_v33  ;;  %v2377_v41 = vmul.f32 0.5, %v2286_v33  ;;  %vm668_vm0 = vcmp.ge.f32.partialorder %v2283_v32, 0.0 }
 0x14a   : > { %v2299_v39 = vand.u32 2147483647, %v2289_v35  ;;  %v2302_v40 = vmul.f32 0.70710677, %v2292_v36  ;;  %v2381_v48 = vmul.f32 0.5, %v2292_v36  ;;  %vm666_vm1 = vcmp.ge.f32.partialorder %v2289_v35, 0.0 }
 0x14b   : > { %v524_v42 = vmul.f32 0.3275911, %v516_v37  ;;  %v2306_v43 = vand.u32 2147483647, %v2296_v38  ;;  %v620_v55 = vsub.f32 0.0, %v516_v37  ;;  %vm669_vm2 = vcmp.ge.f32.partialorder %v2296_v38, 0.0 }
 0x14c   : > { %v522_v46 = vmul.f32 0.3275911, %v2299_v39  ;;  %v2314_v47 = vand.u32 2147483647, %v2302_v40  ;;  %v1727_v52 = vpop.f32.mrb[4].mxu0  ;;  %v618_v19 = vsub.f32 0.0, %v2299_v39 }
 0x14d   : > { %v532_v50 = vadd.f32 1.0, %v524_v42  ;;  %v525_v51 = vmul.f32 0.3275911, %v2306_v43  ;;  %v491_v58 = vpop.f32.mrb[5].mxu0  ;;  %v2334_v7 = vadd.f32 %v1727_v52, %v2275_v24  ;;  %v628_v10 = vmul.f32 %v620_v55, %v516_v37  ;;  %v1850_v55 = vld [vmem:[#allocation5 + $0x20] sm:$0xff]  }
 0x14e   : > { %v530_v56 = vadd.f32 1.0, %v522_v46  ;;  %v523_v57 = vmul.f32 0.3275911, %v2314_v47  ;;  %v1728_v62 = vpop.f32.mrb[6].mxu0  ;;  %v2337_v8 = vadd.f32 %v2275_v24, %v491_v58  ;;  %v621_v23 = vsub.f32 0.0, %v2306_v43 }
 0x14f   : > { %1854 = vrcp.f32 %v532_v50  ;;  %v533_v61 = vadd.f32 1.0, %v525_v51  ;;  %v494_v2 = vpop.f32.mrb[7].mxu0  ;;  %v2342_v11 = vadd.f32 %v1728_v62, %v2275_v24  ;;  %v2348_v15 = vmul.f32 0.70710677, %v2334_v7 }
 0x150   : > { %1856 = vrcp.f32 %v530_v56  ;;  %v531_v6 = vadd.f32 1.0, %v523_v57  ;;  %v2351_v16 = vmul.f32 0.70710677, %v2337_v8  ;;  %v2362_v21 = vadd.f32 %v2275_v24, %v494_v2  ;;  %v1849_v24 = vld [vmem:[#allocation5 + $0x18] sm:$0xff]   ;;  %v2395_v57 = vpop.permute.xlu1 %793 }
 0x151   : > { %1858 = vrcp.f32 %v533_v61  ;;  %v2359_v20 = vmul.f32 0.70710677, %v2342_v11  ;;  %v520_v25 = vand.u32 2147483647, %v2348_v15  ;;  %v638_v27 = vmul.f32 1.442695, %v628_v10  ;;  %1735 = vmatprep.subr.bf16.mxu1 %v1849_v24 }
 0x152   : > { %1860 = vrcp.f32 %v531_v6  ;;  %v518_v26 = vand.u32 2147483647, %v2351_v16  ;;  %v619_v28 = vsub.f32 0.0, %v2314_v47  ;;  %v2374_v37 = vmul.f32 0.5, %v2279_v29  ;;  %1736 = vmatpush3.bf16.msra.mxu1 %v1849_v24 }
 0x153   : > { %v521_v30 = vand.u32 2147483647, %v2359_v20  ;;  %v528_v42 = vmul.f32 0.3275911, %v520_v25  ;;  %v626_v46 = vmul.f32 %v618_v19, %v2299_v39  ;;  %v2384_v50 = vmul.f32 0.70710677, %v2362_v21  ;;  %1737 = vmatprep.subr.bf16.mxu1 %v1850_v55 }
 0x154   : > { %v526_v45 = vmul.f32 0.3275911, %v518_v26  ;;  %v629_v51 = vmul.f32 %v621_v23, %v2306_v43  ;;  %v624_v52 = vsub.f32 0.0, %v520_v25  ;;  %1862 = vpow2.f32 %v638_v27  ;;  %v1851_v23 = vld [vmem:[#allocation5 + $0x28] sm:$0xff]  }
 0x155   : > { %v529_v49 = vmul.f32 0.3275911, %v521_v30  ;;  %v536_v29 = vadd.f32 1.0, %v528_v42  ;;  %v627_v36 = vmul.f32 %v619_v28, %v2314_v47  ;;  %v519_v39 = vand.u32 2147483647, %v2384_v50 }
 0x156   : > { %v534_v53 = vadd.f32 1.0, %v526_v45  ;;  %v622_v43 = vsub.f32 0.0, %v518_v26  ;;  %v634_v61 = vmul.f32 1.442695, %v626_v46  ;;  %v640_v2 = vmul.f32 1.442695, %v629_v51  ;;  %1738 = vmatpush3.bf16.msra.mxu1 %v1850_v55 }
 0x157   : > { %1864 = vrcp.f32 %v536_v29  ;;  %v537_v58 = vadd.f32 1.0, %v529_v49  ;;  %v527_v62 = vmul.f32 0.3275911, %v519_v39  ;;  %v632_v47 = vmul.f32 %v624_v52, %v520_v25  ;;  %v2405_v29 = vpop.permute.xlu1 %821  ;;  %1739 = vmatprep.subr.bf16.mxu1 %v1851_v23 }
 0x158   : > { %1866 = vrcp.f32 %v534_v53  ;;  %v625_v6 = vsub.f32 0.0, %v521_v30  ;;  %v636_v14 = vmul.f32 1.442695, %v627_v36  ;;  %v630_v42 = vmul.f32 %v622_v43, %v518_v26 }
 0x159   : > { %v2386_v44 = vpop.eup %1854  ;;  %v535_v19 = vadd.f32 1.0, %v527_v62  ;;  %1868 = vrcp.f32 %v537_v58  ;;  %v623_v45 = vsub.f32 0.0, %v519_v39  ;;  %v646_v51 = vmul.f32 1.442695, %v632_v47 }
 0x15a   : > { %v2389_v33 = vpop.eup %1856  ;;  %v548_v54 = vmul.f32 1.0614054, %v2386_v44  ;;  %1870 = vpow2.f32 %v634_v61  ;;  %v633_v52 = vmul.f32 %v625_v6, %v521_v30  ;;  %v2410_v26 = vmul.f32 0.5, %v2334_v7  ;;  %1740 = vmatpush3.bf16.msra.mxu1 %v1851_v23 }
 0x15b   : > { %v546_v56 = vmul.f32 1.0614054, %v2389_v33  ;;  %v2397_v0 = vpop.eup %1858  ;;  %1872 = vrcp.f32 %v535_v19  ;;  %v642_v58 = vmul.f32 1.442695, %v630_v42  ;;  %v2417_v7 = vmul.f32 0.5, %v2337_v8 }
 0x15c   : > { %v556_v59 = vadd.f32 -1.4531521, %v548_v54  ;;  %v549_v13 = vmul.f32 1.0614054, %v2397_v0  ;;  %v2401_v27 = vpop.eup %1860  ;;  %1874 = vpow2.f32 %v640_v2  ;;  %v648_v6 = vmul.f32 1.442695, %v633_v52 }
 0x15d   : > { %v554_v1 = vadd.f32 -1.4531521, %v546_v56  ;;  %v547_v24 = vmul.f32 1.0614054, %v2401_v27  ;;  %v1852_v56 = vld [vmem:[#allocation5 + $0x30] sm:$0xff]   ;;  %1876 = vpow2.f32 %v636_v14  ;;  %v1853_v14 = vld [vmem:[#allocation5 + $0x38] sm:$0xff]  }
 0x15e   : > { %v564_v10 = vmul.f32 %v2386_v44, %v556_v59  ;;  %v557_v25 = vadd.f32 -1.4531521, %v549_v13  ;;  %v631_v59 = vmul.f32 %v623_v45, %v519_v39  ;;  %v1863_v61 = vpop.eup %1862  ;;  %1878 = vpow2.f32 %v646_v51  ;;  %1741 = vmatprep.subr.bf16.mxu1 %v1852_v56  ;;  %v2426_v45 = vpop.permute.xlu1 %742 }
 0x15f   : > { %v562_v28 = vmul.f32 %v2389_v33, %v554_v1  ;;  %v555_v36 = vadd.f32 -1.4531521, %v547_v24  ;;  %1880 = vpow2.f32 %v642_v58  ;;  %1742 = vmatpush3.bf16.msra.mxu1 %v1852_v56  ;;  %vm667_vm3 = vcmp.ge.f32.partialorder %v2302_v40, 0.0 }
 0x160   : > { %v572_v46 = vadd.f32 1.4214138, %v564_v10  ;;  %v565_v54 = vmul.f32 %v2397_v0, %v557_v25  ;;  %v644_v8 = vmul.f32 1.442695, %v631_v59  ;;  %1882 = vpow2.f32 %v648_v6  ;;  %1743 = vmatprep.subr.bf16.mxu1 %v1853_v14 }
 0x161   : > { %v570_v49 = vadd.f32 1.4214138, %v562_v28  ;;  %v563_v55 = vmul.f32 %v2401_v27, %v555_v36  ;;  %v2414_v1 = vpop.eup %1864  ;;  %vm672_vm4 = vcmp.ge.f32.partialorder %v2348_v15, 0.0  ;;  %vm670_vm6 = vcmp.ge.f32.partialorder %v2351_v16, 0.0 }
 0x162   : > { %v580_v53 = vmul.f32 %v2386_v44, %v572_v46  ;;  %v573_v30 = vadd.f32 1.4214138, %v565_v54  ;;  %v2419_v10 = vpop.eup %1866  ;;  %v552_v19 = vmul.f32 1.0614054, %v2414_v1  ;;  %1884 = vpow2.f32 %v644_v8 }
 0x163   : > { %v578_v43 = vmul.f32 %v2389_v33, %v570_v49  ;;  %v571_v13 = vadd.f32 1.4214138, %v563_v55  ;;  %v550_v42 = vmul.f32 1.0614054, %v2419_v10  ;;  %v2429_v49 = vpop.eup %1868  ;;  %1744 = vmatpush3.bf16.msra.mxu1 %v1853_v14  ;;  %vm673_vm8 = vcmp.ge.f32.partialorder %v2359_v20, 0.0 }
 0x164   : > { %v588_v62 = vadd.f32 -0.28449672, %v580_v53  ;;  %v581_v39 = vmul.f32 %v2397_v0, %v573_v30  ;;  %v560_v24 = vadd.f32 -1.4531521, %v552_v19  ;;  %v2433_v53 = vmul.f32 0.5, %v2342_v11  ;;  %v1871_v54 = vpop.eup %1870 }
 0x165   : > { %v586_v47 = vadd.f32 -0.28449672, %v578_v43  ;;  %v579_v25 = vmul.f32 %v2401_v27, %v571_v13  ;;  %v558_v52 = vadd.f32 -1.4531521, %v550_v42  ;;  %v2441_v30 = vpop.eup %1872  ;;  %v553_v56 = vmul.f32 1.0614054, %v2429_v49 }
 0x166   : > { %v596_v2 = vmul.f32 %v2386_v44, %v588_v62  ;;  %v589_v46 = vadd.f32 -0.28449672, %v581_v39  ;;  %v568_v59 = vmul.f32 %v2414_v1, %v560_v24  ;;  %v2439_v62 = vpop.permute.xlu0 %727  ;;  %v1875_v39 = vpop.eup %1874  ;;  %v551_v42 = vmul.f32 1.0614054, %v2441_v30 }
 0x167   : > { %v594_v28 = vmul.f32 %v2389_v33, %v586_v47  ;;  %v587_v58 = vadd.f32 -0.28449672, %v579_v25  ;;  %v566_v11 = vmul.f32 %v2419_v10, %v558_v52  ;;  %vm671_vm9 = vcmp.ge.f32.partialorder %v2384_v50, 0.0 }
 0x168   : > { %v604_v23 = vadd.f32 0.2548296, %v596_v2  ;;  %v597_v43 = vmul.f32 %v2397_v0, %v589_v46  ;;  %v576_v2 = vadd.f32 1.4214138, %v568_v59 }
 0x169   : > { %v602_v51 = vadd.f32 0.2548296, %v594_v28  ;;  %v595_v6 = vmul.f32 %v2401_v27, %v587_v58  ;;  %v574_v19 = vadd.f32 1.4214138, %v566_v11  ;;  %v561_v28 = vadd.f32 -1.4531521, %v553_v56 }
 0x16a   : > { %v612_v36 = vmul.f32 %v2386_v44, %v604_v23  ;;  %v605_v47 = vadd.f32 0.2548296, %v597_v43  ;;  %v802_v23 = vpop.permute.xlu1 %801 }
 0x16b   : > { %v610_v55 = vmul.f32 %v2389_v33, %v602_v51  ;;  %v1877_v33 = vpop.eup %1876  ;;  %v603_v8 = vadd.f32 0.2548296, %v595_v6  ;;  %v582_v52 = vmul.f32 %v2419_v10, %v574_v19 }
 0x16c   : > { %v652_v44 = vmul.f32 %v1863_v61, %v612_v36  ;;  %v613_v25 = vmul.f32 %v2397_v0, %v605_v47  ;;  %v584_v61 = vmul.f32 %v2414_v1, %v576_v2  ;;  %v1879_v24 = vpop.eup %1878  ;;  %v559_v36 = vadd.f32 -1.4531521, %v551_v42 }
 0x16d   : > { %v650_v13 = vmul.f32 %v1871_v54, %v610_v55  ;;  %v569_v54 = vmul.f32 %v2429_v49, %v561_v28  ;;  %v611_v14 = vmul.f32 %v2401_v27, %v603_v8  ;;  %v2455_v55 = vpop.permute.xlu0 %757  ;;  %v1881_v0 = vpop.eup %1880  ;;  %v590_v56 = vadd.f32 -0.28449672, %v582_v52 }
 0x16e   : > { %v660_v46 = vsub.f32 1.0, %v652_v44  ;;  %v653_v58 = vmul.f32 %v1875_v39, %v613_v25  ;;  %v592_v59 = vadd.f32 -0.28449672, %v584_v61  ;;  %v567_v47 = vmul.f32 %v2441_v30, %v559_v36  ;;  %v1883_v28 = vpop.eup %1882  ;;  %v806_v8 = vpop.permute.xlu1 %805 }
 0x16f   : > { %v658_v51 = vsub.f32 1.0, %v650_v13  ;;  %v577_v44 = vadd.f32 1.4214138, %v569_v54  ;;  %v651_v13 = vmul.f32 %v1877_v33, %v611_v14  ;;  %v598_v42 = vmul.f32 %v2419_v10, %v590_v56  ;;  %v2465_v32 = vpop.eup %1884 }
 0x170   : > { %v676_v43 = vsub.f32 0.0, %v660_v46  ;;  %v661_v2 = vsub.f32 1.0, %v653_v58  ;;  %v600_v19 = vmul.f32 %v2414_v1, %v592_v59  ;;  %v575_v35 = vadd.f32 1.4214138, %v567_v47 }
 0x171   : > { %v674_v11 = vsub.f32 0.0, %v658_v51  ;;  %v585_v25 = vmul.f32 %v2429_v49, %v577_v44  ;;  %v659_v54 = vsub.f32 1.0, %v651_v13 }
 0x172   : > { %v684_v6 = vsel %vm668_vm0, %v660_v46, %v676_v43  ;;  %v677_v52 = vsub.f32 0.0, %v661_v2  ;;  %v608_v36 = vadd.f32 0.2548296, %v600_v19  ;;  %v606_v46 = vadd.f32 0.2548296, %v598_v42 }
 0x173   : > { %v700_v39 = vadd.f32 1.0, %v684_v6  ;;  %v682_v27 = vsel %vm666_vm1, %v658_v51, %v674_v11  ;;  %v593_v43 = vadd.f32 -0.28449672, %v585_v25  ;;  %v675_v14 = vsub.f32 0.0, %v659_v54 }
 0x174   : > { %v698_v61 = vadd.f32 1.0, %v682_v27  ;;  %v685_v58 = vsel %vm669_vm2, %v661_v2, %v677_v52  ;;  %v616_v59 = vmul.f32 %v2414_v1, %v608_v36  ;;  %v614_v56 = vmul.f32 %v2419_v10, %v606_v46 }
 0x175   : > { %v2468_v33 = vmul.f32 %v700_v39, %v2355_v18  ;;  %v738_v18 = vpop.permute.xlu0 %737  ;;  %v701_v11 = vadd.f32 1.0, %v685_v58  ;;  %v601_v44 = vmul.f32 %v2429_v49, %v593_v43  ;;  %v583_v47 = vmul.f32 %v2441_v30, %v575_v35  ;;  %v2494_v39 = vpop.permute.xlu1 %813 }
 0x176   : > { %v2473_v51 = vmul.f32 %v698_v61, %v2374_v37  ;;  %v683_v37 = vsel %vm667_vm3, %v659_v54, %v675_v14  ;;  %v656_v38 = vmul.f32 %v1879_v24, %v616_v59  ;;  %v2486_v6 = vmul.f32 0.5, %v2362_v21 }
 0x177   : > { %v2489_v1 = vmul.f32 %v802_v23, %v2468_v33  ;;  %v2492_v2 = vmul.f32 %v701_v11, %v2377_v41  ;;  %v699_v13 = vadd.f32 1.0, %v683_v37  ;;  %v654_v19 = vmul.f32 %v1881_v0, %v614_v56 }
 0x178   : > { %v609_v10 = vadd.f32 0.2548296, %v601_v44  ;;  %v2498_v27 = vmul.f32 %v2395_v57, %v2473_v51  ;;  %v664_v40 = vsub.f32 1.0, %v656_v38  ;;  %v591_v21 = vadd.f32 -0.28449672, %v583_v47 }
 0x179   : > { %v834_v24 = vrot.slane %v2489_v1, 1  ;;  %v2503_v23 = vmul.f32 %v699_v13, %v2381_v48  ;;  %v662_v41 = vsub.f32 1.0, %v654_v19  ;;  %v768_v0 = vmul.f32 %v2426_v45, %v2492_v2  ;;  %v748_v54 = vpop.permute.xlu0 %747  ;;  %v2518_v43 = vpop.permute.xlu1 %752 }
 0x17a   : > { %v617_v42 = vmul.f32 %v2429_v49, %v609_v10  ;;  %v680_v25 = vsub.f32 0.0, %v664_v40  ;;  %v599_v61 = vmul.f32 %v2441_v30, %v591_v21  ;;  %v2511_v57 = vmul.f32 %v2439_v62, %v2473_v51 }
 0x17b   : > { %v2514_v52 = vmul.f32 %v806_v8, %v2492_v2  ;;  %v678_v36 = vsub.f32 0.0, %v662_v41  ;;  %v776_v46 = vrot.slane %v768_v0, 7  ;;  %v766_v49 = vmul.f32 %v2364_v22, %v2503_v23 }
 0x17c   : > { %v657_v48 = vmul.f32 %v1883_v28, %v617_v42  ;;  %v688_v45 = vsel %vm672_vm4, %v664_v40, %v680_v25  ;;  %v607_v35 = vadd.f32 0.2548296, %v599_v61  ;;  %v773_v58 = vrot.slane %v2511_v57, 7 }
 0x17d   : > { %v835_v62 = vrot.slane %v2514_v52, 1  ;;  %v704_v14 = vadd.f32 1.0, %v688_v45  ;;  %v686_v8 = vsel %vm670_vm6, %v662_v41, %v678_v36  ;;  %v774_v28 = vrot.slane %v766_v49, 7  ;;  %v798_v44 = vpop.permute.xlu0 %797  ;;  %v2552_v10 = vpop.permute.xlu1 %1006 }
 0x17e   : > { %v665_v59 = vsub.f32 1.0, %v657_v48  ;;  %v702_v11 = vadd.f32 1.0, %v686_v8  ;;  %v615_v56 = vmul.f32 %v2441_v30, %v607_v35  ;;  %v767_v22 = vmul.f32 %v738_v18, %v2468_v33 }
 0x17f   : > { %v2531_v15 = vsel %vm840_vm5, %v834_v24, %v835_v62  ;;  %v2535_v47 = vmul.f32 %v704_v14, %v2410_v26  ;;  %v2539_v16 = vsel %vm783_vm7, %v773_v58, %v774_v28  ;;  %v825_v38 = vmul.f32 %v798_v44, %v2503_v23 }
 0x180   : > { %v681_v37 = vsub.f32 0.0, %v665_v59  ;;  %v2543_v30 = vmul.f32 %v702_v11, %v2417_v7  ;;  %v655_v1 = vmul.f32 %v2465_v32, %v615_v56  ;;  %v775_v13 = vrot.slane %v767_v22, 7 }
 0x181   : > { %v832_v18 = vrot.slane %v2498_v27, 1  ;;  %v771_v19 = vmul.f32 %v2455_v55, %v2535_v47  ;;  %v833_v40 = vrot.slane %v825_v38, 1  ;;  %v2564_v20 = vmul.f32 %v2327_v3, %v2539_v16  ;;  %v810_v22 = vpop.permute.xlu0 %809 }
 0x182   : > { %v689_v26 = vsel %vm673_vm8, %v665_v59, %v681_v37  ;;  %v663_v41 = vsub.f32 1.0, %v655_v1  ;;  %v2556_v7 = vsel %vm783_vm7, %v775_v13, %v776_v46  ;;  %v2560_v32 = vsel %vm783_vm7, %v774_v28, %v775_v13  ;;  %v1015_v59 = vpop.permute.xlu1 %1014 }
 0x183   : > { %v705_v21 = vadd.f32 1.0, %v689_v26  ;;  %v779_v27 = vrot.slane %v771_v19, 7  ;;  %v769_v55 = vmul.f32 %v748_v54, %v2543_v30  ;;  %v854_v42 = vmul.f32 %v2329_v4, %v2539_v16 }
 0x184   : > { %v679_v25 = vsub.f32 0.0, %v663_v41  ;;  %v2574_v61 = vsel %vm840_vm5, %v833_v40, %v834_v24  ;;  %v2578_v57 = vsel %vm840_vm5, %v832_v18, %v833_v40  ;;  %v907_v36 = vmul.f32 %v2327_v3, %v2560_v32 }
 0x185   : > { %v2570_v0 = vmul.f32 %v705_v21, %v2433_v53  ;;  %v908_v54 = vmul.f32 %v2327_v3, %v2556_v7  ;;  %v777_v48 = vrot.slane %v769_v55, 7  ;;  %v866_v53 = vmul.f32 %v2324_v63, %v2503_v23 }
 0x186   : > { %v687_v49 = vsel %vm671_vm9, %v663_v41, %v679_v25  ;;  %v886_v35 = vmul.f32 %v2339_v9, %v2574_v61  ;;  %v919_v50 = vmul.f32 %v2331_v5, %v2468_v33  ;;  %v2607_v56 = vmul.f32 %v2344_v12, %v2578_v57 }
 0x187   : > { %v772_v24 = vmul.f32 %v2322_v60, %v2570_v0  ;;  %v2592_v45 = vmul.f32 %v2405_v29, %v2570_v0  ;;  %v703_v14 = vadd.f32 1.0, %v687_v49  ;;  %v2598_v8 = vsel %vm783_vm7, %v776_v46, %v777_v48 }
 0x188   : > { %v874_v28 = vadd.f32 %v866_v53, %v854_v42  ;;  %v872_v29 = vmul.f32 %v2324_v63, %v2570_v0  ;;  %v927_v37 = vadd.f32 %v919_v50, %v907_v36  ;;  %v828_v38 = vmul.f32 %v810_v22, %v2543_v30  ;;  %v1019_v53 = vpop.permute.xlu1 %1018 }
 0x189   : > { %v780_v11 = vrot.slane %v772_v24, 7  ;;  %v839_v60 = vrot.slane %v2592_v45, 1  ;;  %v2610_v44 = vmul.f32 %v703_v14, %v2486_v6  ;;  %v939_v6 = vmul.f32 %v2344_v12, %v2531_v15 }
 0x18a   : > { %v894_v46 = vadd.f32 %v886_v35, %v874_v28  ;;  %v855_v21 = vmul.f32 %v2329_v4, %v2560_v32  ;;  %v836_v36 = vrot.slane %v828_v38, 1  ;;  %v867_v45 = vmul.f32 %v2324_v63, %v2468_v33 }
 0x18b   : > { %v2615_v1 = vsel %vm783_vm7, %v780_v11, %v773_v58  ;;  %v2619_v13 = vsel %vm783_vm7, %v779_v27, %v780_v11  ;;  %v2623_v26 = vsel %vm840_vm5, %v839_v60, %v832_v18  ;;  %v829_v19 = vmul.f32 %v2494_v39, %v2610_v44  ;;  %v2670_v11 = vld [vmem:[%s3035_s4 + $0x8] ss:$0 sm:$0xff] }
 0x18c   : > { %v770_v40 = vmul.f32 %v2518_v43, %v2610_v44  ;;  %v2633_v58 = vmul.f32 %v2327_v3, %v2598_v8  ;;  %v2639_v18 = vmul.f32 %v2327_v3, %v2615_v1  ;;  %v860_v41 = vmul.f32 %v2329_v4, %v2619_v13 }
 0x18d   : > { %v947_v55 = vadd.f32 %v939_v6, %v927_v37  ;;  %v1039_v42 = vmul.f32 %v1015_v59, %v894_v46  ;;  %v837_v39 = vrot.slane %v829_v19, 1  ;;  %v892_v43 = vmul.f32 %v2339_v9, %v2623_v26  ;;  %v818_v46 = vpop.permute.xlu0 %817 }
 0x18e   : > { %v778_v25 = vrot.slane %v770_v40, 7  ;;  %v880_v49 = vadd.f32 %v872_v29, %v860_v41  ;;  %v920_v35 = vmul.f32 %v2331_v5, %v2492_v2  ;;  %v844_v50 = vsel %vm840_vm5, %v835_v62, %v836_v36 }
 0x18f   : > { %v2645_v24 = vadd.f32 %v1039_v42, %v947_v55  ;;  %v2661_v28 = vsel %vm840_vm5, %v836_v36, %v837_v39  ;;  %v887_v22 = vmul.f32 %v2339_v9, %v2531_v15  ;;  %v940_v52 = vmul.f32 %v2344_v12, %v844_v50 }
 0x190   : > { %v2653_v14 = vsel %vm783_vm7, %v778_v25, %v779_v27  ;;  %v2657_v59 = vsel %vm783_vm7, %v777_v48, %v778_v25  ;;  %v900_v29 = vadd.f32 %v892_v43, %v880_v49  ;;  %v875_v48 = vadd.f32 %v867_v45, %v855_v21 }
 0x191   : > { %v910_v27 = vmul.f32 %v2327_v3, %v2657_v59  ;;  %v928_v37 = vadd.f32 %v920_v35, %v908_v54  ;;  %v830_v38 = vmul.f32 %v818_v46, %v2535_v47  ;;  %v959_v62 = vmul.f32 %v2371_v34, %v2560_v32  ;;  %v1059_v54 = vpop.permute.xlu1 %1058 }
 0x192   : > { %v2681_v6 = vmul.f32 %v2552_v10, %v900_v29  ;;  %v895_v19 = vadd.f32 %v887_v22, %v875_v48  ;;  %v971_v40 = vmul.f32 %v2353_v17, %v2468_v33  ;;  %v991_v21 = vmul.f32 %v2670_v11, %v2531_v15  ;;  %v1011_v29 = vpop.permute.xlu0 %1010 }
 0x193   : > { %v948_v41 = vadd.f32 %v940_v52, %v928_v37  ;;  %v838_v55 = vrot.slane %v830_v38, 1  ;;  %v853_v42 = vmul.f32 %v2329_v4, %v2615_v1  ;;  %v865_v25 = vmul.f32 %v2324_v63, %v2473_v51 }
 0x194   : > { %v1040_v32 = vmul.f32 %v1019_v53, %v895_v19  ;;  %v979_v43 = vadd.f32 %v971_v40, %v959_v62  ;;  %v885_v10 = vmul.f32 %v2339_v9, %v2578_v57  ;;  %v918_v33 = vmul.f32 %v2331_v5, %v2503_v23 }
 0x195   : > { %v2697_v15 = vsel %vm840_vm5, %v838_v55, %v839_v60  ;;  %v2701_v36 = vsel %vm840_vm5, %v837_v39, %v838_v55  ;;  %v873_v49 = vadd.f32 %v865_v25, %v853_v42  ;;  %v938_v45 = vmul.f32 %v2344_v12, %v2574_v61  ;;  %v1063_v19 = vpop.permute.xlu1 %1062 }
 0x196   : > { %v2705_v53 = vadd.f32 %v1040_v32, %v948_v41  ;;  %v999_v35 = vadd.f32 %v991_v21, %v979_v43  ;;  %v926_v48 = vadd.f32 %v918_v33, %v2564_v20  ;;  %v960_v22 = vmul.f32 %v2371_v34, %v2556_v7 }
 0x197   : > { %v893_v46 = vadd.f32 %v885_v10, %v873_v49  ;;  %v972_v60 = vmul.f32 %v2353_v17, %v2492_v2  ;;  %v992_v31 = vmul.f32 %v2670_v11, %v844_v50  ;;  %v857_v39 = vmul.f32 %v2329_v4, %v2598_v8  ;;  %v1027_v49 = vpop.permute.xlu0 %1026 }
 0x198   : > { %v1086_v37 = vmul.f32 %v1059_v54, %v999_v35  ;;  %v946_v52 = vadd.f32 %v938_v45, %v926_v48  ;;  %v869_v38 = vmul.f32 %v2324_v63, %v2543_v30  ;;  %v889_v20 = vmul.f32 %v2339_v9, %v2661_v28 }
 0x199   : > { %v1038_v62 = vmul.f32 %v1011_v29, %v893_v46  ;;  %v980_v40 = vadd.f32 %v972_v60, %v960_v22  ;;  %v922_v21 = vmul.f32 %v2331_v5, %v2610_v44  ;;  %v942_v41 = vmul.f32 %v2344_v12, %v2701_v36 }
 0x19a   : > { %v877_v55 = vadd.f32 %v869_v38, %v857_v39  ;;  %v856_v54 = vmul.f32 %v2329_v4, %v2556_v7  ;;  %v868_v42 = vmul.f32 %v2324_v63, %v2492_v2  ;;  %v888_v25 = vmul.f32 %v2339_v9, %v844_v50  ;;  %v1023_v38 = vpop.permute.xlu1 %1022 }
 0x19b   : > { %v1046_v32 = vadd.f32 %v1038_v62, %v946_v52  ;;  %v1000_v43 = vadd.f32 %v992_v31, %v980_v40  ;;  %v930_v10 = vadd.f32 %v922_v21, %v910_v27  ;;  %v921_v33 = vmul.f32 %v2331_v5, %v2543_v30  ;;  %v2745_v52 = vld [vmem:[%s3036_s5] ss:$0 sm:$0xff] }
 0x19c   : > { %v897_v45 = vadd.f32 %v889_v20, %v877_v55  ;;  %v876_v35 = vadd.f32 %v868_v42, %v856_v54  ;;  %v941_v29 = vmul.f32 %v2344_v12, %v2661_v28  ;;  %v917_v7 = vmul.f32 %v2331_v5, %v2473_v51 }
 0x19d   : > { %v2734_v48 = vadd.f32 %v1086_v37, %v1046_v32  ;;  %v1087_v2 = vmul.f32 %v1063_v19, %v1000_v43  ;;  %v950_v22 = vadd.f32 %v942_v41, %v930_v10  ;;  %v929_v50 = vadd.f32 %v921_v33, %v2633_v58 }
 0x19e   : > { %v1042_v46 = vmul.f32 %v1027_v49, %v897_v45  ;;  %v896_v27 = vadd.f32 %v888_v25, %v876_v35  ;;  %v925_v60 = vadd.f32 %v917_v7, %v2639_v18  ;;  %v958_v31 = vmul.f32 %v2371_v34, %v2539_v16  ;;  %v1031_v35 = vpop.permute.xlu1 %1030 }
 0x19f   : > { %v911_v39 = vmul.f32 %v2327_v3, %v2653_v14  ;;  %v1095_v37 = vadd.f32 %v1087_v2, %v2645_v24  ;;  %v949_v20 = vadd.f32 %v941_v29, %v929_v50  ;;  %v970_v58 = vmul.f32 %v2353_v17, %v2503_v23  ;;  %v1055_v23 = vpop.permute.xlu0 %1054 }
 0x1a0   : > { %v2750_v62 = vadd.f32 %v1042_v46, %v950_v22  ;;  %v1041_v18 = vmul.f32 %v1023_v38, %v896_v27  ;;  %v945_v16 = vadd.f32 %v2607_v56, %v925_v60  ;;  %v858_v19 = vmul.f32 %v2329_v4, %v2657_v59 }
 0x1a1   : > { %v978_v40 = vadd.f32 %v970_v58, %v958_v31  ;;  %v990_v21 = vmul.f32 %v2670_v11, %v2574_v61  ;;  %v870_v24 = vmul.f32 %v2324_v63, %v2610_v44  ;;  %v2760_v41 = vadd.f32 %v2745_v52, %v1095_v37 }
 0x1a2   : > { %v2762_v55 = vadd.f32 %v1041_v18, %v949_v20  ;;  %v1045_v54 = vadd.f32 %v2681_v6, %v945_v16  ;;  %v923_v56 = vmul.f32 %v2331_v5, %v2535_v47  ;;  %v890_v32 = vmul.f32 %v2339_v9, %v2701_v36 }
 0x1a3   : > { %v998_v42 = vadd.f32 %v990_v21, %v978_v40  ;;  %v878_v25 = vadd.f32 %v870_v24, %v858_v19  ;;  %v943_v61 = vmul.f32 %v2344_v12, %v2697_v15  ;;  %v961_v10 = vmul.f32 %v2371_v34, %v2598_v8 }
 0x1a4   : > { %v931_v43 = vadd.f32 %v923_v56, %v911_v39  ;;  %v973_v33 = vmul.f32 %v2353_v17, %v2543_v30  ;;  %v993_v6 = vmul.f32 %v2670_v11, %v2661_v28  ;;  %v912_v49 = vmul.f32 %v2327_v3, %v2619_v13  ;;  %v1067_v28 = vpop.permute.xlu0 %1066 }
 0x1a5   : > { %v1085_v45 = vmul.f32 %v1055_v23, %v998_v42  ;;  %v898_v29 = vadd.f32 %v890_v32, %v878_v25  ;;  %v859_v22 = vmul.f32 %v2329_v4, %v2653_v14  ;;  %v871_v8 = vmul.f32 %v2324_v63, %v2535_v47 }
 0x1a6   : > { %v951_v7 = vadd.f32 %v943_v61, %v931_v43  ;;  %v981_v2 = vadd.f32 %v973_v33, %v961_v10  ;;  %v2784_v50 = vmul.f32 0.70710677, %v2760_v41  ;;  %v891_v3 = vmul.f32 %v2339_v9, %v2697_v15  ;;  %v1035_v9 = vpop.permute.xlu1 %1034 }
 0x1a7   : > { %v1093_v30 = vadd.f32 %v1085_v45, %v1045_v54  ;;  %v1043_v46 = vmul.f32 %v1031_v35, %v898_v29  ;;  %v879_v60 = vadd.f32 %v871_v8, %v859_v22  ;;  %v924_v31 = vmul.f32 %v2331_v5, %v2570_v0 }
 0x1a8   : > { %v1001_v27 = vadd.f32 %v993_v6, %v981_v2  ;;  %v944_v20 = vmul.f32 %v2344_v12, %v2623_v26  ;;  %v1125_v58 = vand.u32 2147483647, %v2784_v50  ;;  %v962_v5 = vmul.f32 %v2371_v34, %v2657_v59  ;;  %v1071_v56 = vpop.permute.xlu0 %1070 }
 0x1a9   : > { %v2791_v39 = vadd.f32 %v2745_v52, %v1093_v30  ;;  %v2793_v4 = vadd.f32 %v1043_v46, %v951_v7  ;;  %v899_v37 = vadd.f32 %v891_v3, %v879_v60  ;;  %v932_v38 = vadd.f32 %v924_v31, %v912_v49 }
 0x1aa   : > { %v1088_v63 = vmul.f32 %v1067_v28, %v1001_v27  ;;  %v974_v21 = vmul.f32 %v2353_v17, %v2610_v44  ;;  %v994_v12 = vmul.f32 %v2670_v11, %v2701_v36  ;;  %v963_v23 = vmul.f32 %v2371_v34, %v2653_v14  ;;  %v1075_v45 = vpop.permute.xlu1 %1074 }
 0x1ab   : > { %v2799_v18 = vmul.f32 0.70710677, %v2791_v39  ;;  %v952_v19 = vadd.f32 %v944_v20, %v932_v38  ;;  %v1044_v40 = vmul.f32 %v1035_v9, %v899_v37  ;;  %v975_v42 = vmul.f32 %v2353_v17, %v2535_v47 }
 0x1ac   : > { %v1096_v16 = vadd.f32 %v1088_v63, %v2705_v53  ;;  %v982_v53 = vadd.f32 %v974_v21, %v962_v5  ;;  %v1133_v25 = vmul.f32 0.3275911, %v1125_v58  ;;  %v957_v32 = vmul.f32 %v2371_v34, %v2615_v1 }
 0x1ad   : > { %v2807_v24 = vand.u32 2147483647, %v2799_v18  ;;  %v1052_v59 = vadd.f32 %v1044_v40, %v952_v19  ;;  %v983_v14 = vadd.f32 %v975_v42, %v963_v23  ;;  %v995_v43 = vmul.f32 %v2670_v11, %v2697_v15 }
 0x1ae   : > { %v2814_v54 = vadd.f32 %v2745_v52, %v1096_v16  ;;  %v1002_v61 = vadd.f32 %v994_v12, %v982_v53  ;;  %v969_v33 = vmul.f32 %v2353_v17, %v2473_v51  ;;  %v989_v1 = vmul.f32 %v2670_v11, %v2578_v57  ;;  %v1083_v51 = vpop.permute.xlu0 %1082  ;;  %v1079_v31 = vpop.permute.xlu1 %1078 }
 0x1af   : > { %v1131_v44 = vmul.f32 0.3275911, %v2807_v24  ;;  %v1003_v49 = vadd.f32 %v995_v43, %v983_v14  ;;  %v964_v29 = vmul.f32 %v2371_v34, %v2619_v13  ;;  %v1141_v7 = vadd.f32 1.0, %v1133_v25 }
 0x1b0   : > { %v2822_v36 = vmul.f32 0.70710677, %v2814_v54  ;;  %v1089_v6 = vmul.f32 %v1071_v56, %v1002_v61  ;;  %v977_v35 = vadd.f32 %v969_v33, %v957_v32  ;;  %v976_v30 = vmul.f32 %v2353_v17, %v2570_v0 }
 0x1b1   : > { %v1139_v10 = vadd.f32 1.0, %v1131_v44  ;;  %v1090_v22 = vmul.f32 %v1075_v45, %v1003_v49  ;;  %v996_v13 = vmul.f32 %v2670_v11, %v2623_v26  ;;  %v1229_v60 = vsub.f32 0.0, %v1125_v58 }
 0x1b2   : > { %v2829_v47 = vand.u32 2147483647, %v2822_v36  ;;  %v1097_v2 = vadd.f32 %v1089_v6, %v2762_v55  ;;  %v997_v8 = vadd.f32 %v989_v1, %v977_v35  ;;  %v984_v34 = vadd.f32 %v976_v30, %v964_v29 }
 0x1b3   : > { %1886 = vrcp.f32 %v1139_v10  ;;  %v1098_v57 = vadd.f32 %v1090_v22, %v2750_v62  ;;  %v2847_v55 = vadd.f32 %v2745_v52, %v2734_v48  ;;  %v1237_v37 = vmul.f32 %v1229_v60, %v1125_v58 }
 0x1b4   : > { %v1134_v15 = vmul.f32 0.3275911, %v2829_v47  ;;  %v2840_v28 = vadd.f32 %v2745_v52, %v1097_v2  ;;  %v1092_v27 = vmul.f32 %v1083_v51, %v997_v8  ;;  %1888 = vrcp.f32 %v1141_v7 }
 0x1b5   : > { %v2853_v17 = vadd.f32 %v2745_v52, %v1098_v57  ;;  %v1004_v62 = vadd.f32 %v996_v13, %v984_v34  ;;  %v2856_v63 = vmul.f32 0.70710677, %v2847_v55  ;;  %v1227_v5 = vsub.f32 0.0, %v2807_v24 }
 0x1b6   : > { %v1142_v46 = vadd.f32 1.0, %v1134_v15  ;;  %v2850_v3 = vmul.f32 0.70710677, %v2840_v28  ;;  %v1100_v0 = vadd.f32 %v1092_v27, %v1052_v59  ;;  %v1247_v56 = vmul.f32 1.442695, %v1237_v37 }
 0x1b7   : > { %v2860_v11 = vmul.f32 0.70710677, %v2853_v17  ;;  %v1091_v20 = vmul.f32 %v1079_v31, %v1004_v62  ;;  %v1124_v9 = vand.u32 2147483647, %v2856_v63  ;;  %v1235_v25 = vmul.f32 %v1227_v5, %v2807_v24 }
 0x1b8   : > { %1890 = vrcp.f32 %v1142_v46  ;;  %v1127_v26 = vand.u32 2147483647, %v2850_v3  ;;  %v2863_v48 = vadd.f32 %v2745_v52, %v1100_v0  ;;  %v1230_v44 = vsub.f32 0.0, %v2829_v47 }
 0x1b9   : > { %v1128_v16 = vand.u32 2147483647, %v2860_v11  ;;  %v1099_v21 = vadd.f32 %v1091_v20, %v2793_v4  ;;  %v1132_v12 = vmul.f32 0.3275911, %v1124_v9  ;;  %v2890_v45 = vmul.f32 0.5, %v2760_v41 }
 0x1ba   : > { %v1135_v38 = vmul.f32 0.3275911, %v1127_v26  ;;  %v2869_v19 = vmul.f32 0.70710677, %v2863_v48  ;;  %v1231_v10 = vsub.f32 0.0, %v1127_v26  ;;  %v1238_v1 = vmul.f32 %v1230_v44, %v2829_v47 }
 0x1bb   : > { %v1136_v59 = vmul.f32 0.3275911, %v1128_v16  ;;  %v2876_v53 = vadd.f32 %v2745_v52, %v1099_v21  ;;  %v1140_v42 = vadd.f32 1.0, %v1132_v12  ;;  %v1232_v52 = vsub.f32 0.0, %v1128_v16 }
 0x1bc   : > { %v1143_v40 = vadd.f32 1.0, %v1135_v38  ;;  %v1130_v58 = vand.u32 2147483647, %v2869_v19  ;;  %v1243_v35 = vmul.f32 1.442695, %v1235_v25  ;;  %v2895_v2 = vmul.f32 0.5, %v2814_v54 }
 0x1bd   : > { %v2872_v23 = vpop.eup %1886  ;;  %v1144_v32 = vadd.f32 1.0, %v1136_v59  ;;  %v2883_v4 = vmul.f32 0.70710677, %v2876_v53  ;;  %v1239_v22 = vmul.f32 %v1231_v10, %v1127_v26  ;;  %v1240_v30 = vmul.f32 %v1232_v52, %v1128_v16 }
 0x1be   : > { %1892 = vrcp.f32 %v1143_v40  ;;  %v1138_v61 = vmul.f32 0.3275911, %v1130_v58  ;;  %v2880_v14 = vpop.eup %1888  ;;  %v1155_v43 = vmul.f32 1.0614054, %v2872_v23  ;;  %v1234_v29 = vsub.f32 0.0, %v1130_v58 }
 0x1bf   : > { %1894 = vrcp.f32 %v1144_v32  ;;  %v1129_v49 = vand.u32 2147483647, %v2883_v4  ;;  %v1157_v51 = vmul.f32 1.0614054, %v2880_v14  ;;  %v1228_v57 = vsub.f32 0.0, %v1124_v9 }
 0x1c0   : > { %v1146_v33 = vadd.f32 1.0, %v1138_v61  ;;  %1896 = vrcp.f32 %v1140_v42  ;;  %v1163_v24 = vadd.f32 -1.4531521, %v1155_v43  ;;  %v1249_v27 = vmul.f32 1.442695, %v1238_v1 }
 0x1c1   : > { %1898 = vpow2.f32 %v1247_v56  ;;  %v1137_v7 = vmul.f32 0.3275911, %v1129_v49  ;;  %v1165_v47 = vadd.f32 -1.4531521, %v1157_v51  ;;  %v1242_v60 = vmul.f32 %v1234_v29, %v1130_v58 }
 0x1c2   : > { %v2886_v6 = vpop.eup %1890  ;;  %1900 = vrcp.f32 %v1146_v33  ;;  %v1171_v15 = vmul.f32 %v2872_v23, %v1163_v24  ;;  %v1233_v0 = vsub.f32 0.0, %v1129_v49  ;;  %v2903_v31 = vmul.f32 0.5, %v2840_v28 }
 0x1c3   : > { %v1158_v8 = vmul.f32 1.0614054, %v2886_v6  ;;  %v1145_v46 = vadd.f32 1.0, %v1137_v7  ;;  %1902 = vpow2.f32 %v1243_v35  ;;  %v1173_v62 = vmul.f32 %v2880_v14, %v1165_v47 }
 0x1c4   : > { %v1179_v41 = vadd.f32 1.4214138, %v1171_v15  ;;  %v1251_v38 = vmul.f32 1.442695, %v1239_v22  ;;  %v1253_v20 = vmul.f32 1.442695, %v1240_v30  ;;  %v1236_v16 = vmul.f32 %v1228_v57, %v1124_v9 }
 0x1c5   : > { %v1166_v34 = vadd.f32 -1.4531521, %v1158_v8  ;;  %1904 = vrcp.f32 %v1145_v46  ;;  %v1181_v21 = vadd.f32 1.4214138, %v1173_v62  ;;  %v1257_v28 = vmul.f32 1.442695, %v1242_v60 }
 0x1c6   : > { %v1187_v54 = vmul.f32 %v2872_v23, %v1179_v41  ;;  %1906 = vpow2.f32 %v1249_v27  ;;  %v1241_v56 = vmul.f32 %v1233_v0, %v1129_v49  ;;  %v1245_v52 = vmul.f32 1.442695, %v1236_v16 }
 0x1c7   : > { %v1174_v26 = vmul.f32 %v2886_v6, %v1166_v34  ;;  %v1189_v61 = vmul.f32 %v2880_v14, %v1181_v21  ;;  %1908 = vpow2.f32 %v1251_v38  ;;  %vm1277_vm10 = vcmp.ge.f32.partialorder %v2784_v50, 0.0 }
 0x1c8   : > { %v2899_v13 = vpop.eup %1892  ;;  %v1195_v5 = vadd.f32 -0.28449672, %v1187_v54  ;;  %v1255_v8 = vmul.f32 1.442695, %v1241_v56  ;;  %1910 = vpow2.f32 %v1253_v20  ;;  %vm1278_vm11 = vcmp.ge.f32.partialorder %v2822_v36, 0.0 }
 0x1c9   : > { %v1159_v37 = vmul.f32 1.0614054, %v2899_v13  ;;  %v2908_v40 = vpop.eup %1894  ;;  %v1182_v12 = vadd.f32 1.4214138, %v1174_v26  ;;  %v1197_v35 = vadd.f32 -0.28449672, %v1189_v61  ;;  %1912 = vpow2.f32 %v1245_v52 }
 0x1ca   : > { %v2910_v58 = vpop.eup %1896  ;;  %v1203_v42 = vmul.f32 %v2872_v23, %v1195_v5  ;;  %v1160_v25 = vmul.f32 1.0614054, %v2908_v40  ;;  %vm1275_vm12 = vcmp.ge.f32.partialorder %v2799_v18, 0.0  ;;  %1914 = vpow2.f32 %v1257_v28 }
 0x1cb   : > { %v1167_v59 = vadd.f32 -1.4531521, %v1159_v37  ;;  %v1899_v44 = vpop.eup %1898  ;;  %v1156_v32 = vmul.f32 1.0614054, %v2910_v58  ;;  %v1190_v9 = vmul.f32 %v2886_v6, %v1182_v12  ;;  %v1205_v46 = vmul.f32 %v2880_v14, %v1197_v35 }
 0x1cc   : > { %v2918_v10 = vpop.eup %1900  ;;  %v1211_v33 = vadd.f32 0.2548296, %v1203_v42  ;;  %v1168_v24 = vadd.f32 -1.4531521, %v1160_v25  ;;  %1916 = vpow2.f32 %v1255_v8  ;;  %vm1279_vm13 = vcmp.ge.f32.partialorder %v2850_v3, 0.0 }
 0x1cd   : > { %v1175_v43 = vmul.f32 %v2899_v13, %v1167_v59  ;;  %v1164_v49 = vadd.f32 -1.4531521, %v1156_v32  ;;  %v1198_v1 = vadd.f32 -0.28449672, %v1190_v9  ;;  %v1162_v22 = vmul.f32 1.0614054, %v2918_v10  ;;  %v1903_v51 = vpop.eup %1902 }
 0x1ce   : > { %v1219_v29 = vmul.f32 %v2872_v23, %v1211_v33  ;;  %v1176_v7 = vmul.f32 %v2908_v40, %v1168_v24  ;;  %v1213_v0 = vadd.f32 0.2548296, %v1205_v46  ;;  %vm1280_vm14 = vcmp.ge.f32.partialorder %v2860_v11, 0.0 }
 0x1cf   : > { %v1183_v15 = vadd.f32 1.4214138, %v1175_v43  ;;  %v1172_v30 = vmul.f32 %v2910_v58, %v1164_v49  ;;  %v1206_v41 = vmul.f32 %v2886_v6, %v1198_v1  ;;  %v2926_v57 = vpop.eup %1904  ;;  %v1170_v23 = vadd.f32 -1.4531521, %v1162_v22 }
 0x1d0   : > { %v1259_v27 = vmul.f32 %v1903_v51, %v1219_v29  ;;  %v1184_v47 = vadd.f32 1.4214138, %v1176_v7  ;;  %v1161_v37 = vmul.f32 1.0614054, %v2926_v57  ;;  %v1907_v38 = vpop.eup %1906  ;;  %v1221_v16 = vmul.f32 %v2880_v14, %v1213_v0 }
 0x1d1   : > { %v1191_v34 = vmul.f32 %v2899_v13, %v1183_v15  ;;  %v1180_v60 = vadd.f32 1.4214138, %v1172_v30  ;;  %v1214_v54 = vadd.f32 0.2548296, %v1206_v41  ;;  %v1178_v21 = vmul.f32 %v2918_v10, %v1170_v23 }
 0x1d2   : > { %v1192_v62 = vmul.f32 %v2908_v40, %v1184_v47  ;;  %v1267_v12 = vsub.f32 1.0, %v1259_v27  ;;  %v1169_v42 = vadd.f32 -1.4531521, %v1161_v37  ;;  %v1261_v32 = vmul.f32 %v1899_v44, %v1221_v16 }
 0x1d3   : > { %v1199_v26 = vadd.f32 -0.28449672, %v1191_v34  ;;  %v1188_v5 = vmul.f32 %v2910_v58, %v1180_v60  ;;  %v1222_v20 = vmul.f32 %v2886_v6, %v1214_v54  ;;  %v1186_v9 = vadd.f32 1.4214138, %v1178_v21  ;;  %v1909_v6 = vpop.eup %1908 }
 0x1d4   : > { %v1200_v59 = vadd.f32 -0.28449672, %v1192_v62  ;;  %v1177_v14 = vmul.f32 %v2926_v57, %v1169_v42  ;;  %v1269_v24 = vsub.f32 1.0, %v1261_v32  ;;  %v1283_v15 = vsub.f32 0.0, %v1267_v12  ;;  %v1911_v41 = vpop.eup %1910 }
 0x1d5   : > { %v1207_v56 = vmul.f32 %v2899_v13, %v1199_v26  ;;  %v1196_v25 = vadd.f32 -0.28449672, %v1188_v5  ;;  %v1262_v61 = vmul.f32 %v1907_v38, %v1222_v20  ;;  %v1194_v44 = vmul.f32 %v2918_v10, %v1186_v9  ;;  %v1913_v34 = vpop.eup %1912 }
 0x1d6   : > { %v1208_v43 = vmul.f32 %v2908_v40, %v1200_v59  ;;  %v1185_v29 = vadd.f32 1.4214138, %v1177_v14  ;;  %v1285_v28 = vsub.f32 0.0, %v1269_v24  ;;  %v1291_v62 = vsel %vm1275_vm12, %v1267_v12, %v1283_v15  ;;  %v1915_v21 = vpop.eup %1914 }
 0x1d7   : > { %v1215_v33 = vadd.f32 0.2548296, %v1207_v56  ;;  %v1204_v52 = vmul.f32 %v2910_v58, %v1196_v25  ;;  %v1270_v49 = vsub.f32 1.0, %v1262_v61  ;;  %v1202_v8 = vadd.f32 -0.28449672, %v1194_v44  ;;  %v1917_v42 = vpop.eup %1916 }
 0x1d8   : > { %v1216_v35 = vadd.f32 0.2548296, %v1208_v43  ;;  %v1193_v46 = vmul.f32 %v2926_v57, %v1185_v29  ;;  %v1307_v59 = vadd.f32 1.0, %v1291_v62  ;;  %v1304_v61 = vmul.f32 0.5, %v2853_v17 }
 0x1d9   : > { %v1223_v1 = vmul.f32 %v2899_v13, %v1215_v33  ;;  %v1212_v7 = vadd.f32 0.2548296, %v1204_v52  ;;  %v1286_v22 = vsub.f32 0.0, %v1270_v49  ;;  %v1293_v13 = vsel %vm1277_vm10, %v1269_v24, %v1285_v28 }
 0x1da   : > { %v1224_v51 = vmul.f32 %v2908_v40, %v1216_v35  ;;  %v1309_v23 = vadd.f32 1.0, %v1293_v13  ;;  %v1201_v26 = vadd.f32 -0.28449672, %v1193_v46  ;;  %v1210_v37 = vmul.f32 %v2918_v10, %v1202_v8 }
 0x1db   : > { %v1263_v30 = vmul.f32 %v1909_v6, %v1223_v1  ;;  %v1220_v27 = vmul.f32 %v2910_v58, %v1212_v7  ;;  %v1294_v47 = vsel %vm1278_vm11, %v1270_v49, %v1286_v22  ;;  %vm1276_vm15 = vcmp.ge.f32.partialorder %v2856_v63, 0.0 }
 0x1dc   : > { %v1310_v60 = vadd.f32 1.0, %v1294_v47  ;;  %v1264_v0 = vmul.f32 %v1911_v41, %v1224_v51  ;;  %v1317_v58 = vmul.f32 %v1309_v23, %v2890_v45  ;;  %v1209_v16 = vmul.f32 %v2926_v57, %v1201_v26 }
 0x1dd   : > { %v1271_v40 = vsub.f32 1.0, %v1263_v30  ;;  %v1260_v54 = vmul.f32 %v1913_v34, %v1220_v27  ;;  %v1218_v20 = vadd.f32 0.2548296, %v1210_v37  ;;  %v1299_v9 = vmul.f32 0.5, %v2791_v39 }
 0x1de   : > { %v1318_v50 = vmul.f32 %v1310_v60, %v2895_v2  ;;  %v1272_v38 = vsub.f32 1.0, %v1264_v0  ;;  %v1217_v32 = vadd.f32 0.2548296, %v1209_v16  ;;  %v1300_v52 = vmul.f32 0.5, %v2847_v55 }
 0x1df   : > { %v1287_v5 = vsub.f32 0.0, %v1271_v40  ;;  %v1268_v36 = vsub.f32 1.0, %v1260_v54  ;;  %v1226_v2 = vmul.f32 %v2918_v10, %v1218_v20  ;;  %v1315_v49 = vmul.f32 %v1307_v59, %v1299_v9 }
 0x1e0   : > { %v1324_v56 = vpack.c.bf16 %v1318_v50, %v1317_v58  ;;  %v1288_v18 = vsub.f32 0.0, %v1272_v38  ;;  %v1225_v6 = vmul.f32 %v2926_v57, %v1217_v32  ;;  %vm1282_vm0 = vcmp.ge.f32.partialorder %v2869_v19, 0.0 }
 0x1e1   : > { %v1295_v12 = vsel %vm1279_vm13, %v1271_v40, %v1287_v5  ;;  %v1284_v25 = vsub.f32 0.0, %v1268_v36  ;;  %v1266_v10 = vmul.f32 %v1915_v21, %v1226_v2  ;;  %vm1281_vm1 = vcmp.ge.f32.partialorder %v2883_v4, 0.0  ;;  %v1627_v4 = vld [vmem:[%s3038_s7] ss:$0 sm:$0xff] }
 0x1e2   : > { %v1311_v45 = vadd.f32 1.0, %v1295_v12  ;;  %v1296_v43 = vsel %vm1280_vm14, %v1272_v38, %v1288_v18  ;;  %v1265_v17 = vmul.f32 %v1917_v42, %v1225_v6  ;;  %v1306_v55 = vmul.f32 0.5, %v2863_v48 }
 0x1e3   : > { %v1292_v33 = vsel %vm1276_vm15, %v1268_v36, %v1284_v25  ;;  %v1312_v14 = vadd.f32 1.0, %v1296_v43  ;;  %v1274_v63 = vsub.f32 1.0, %v1266_v10  ;;  %v1305_v28 = vmul.f32 0.5, %v2876_v53 }
 0x1e4   : > { %v1319_v3 = vmul.f32 %v1311_v45, %v2903_v31  ;;  %v1308_v24 = vadd.f32 1.0, %v1292_v33  ;;  %v1273_v39 = vsub.f32 1.0, %v1265_v17 }
 0x1e5   : > { %v1320_v35 = vmul.f32 %v1312_v14, %v1304_v61  ;;  %v1290_v11 = vsub.f32 0.0, %v1274_v63 }
 0x1e6   : > { %v1316_v1 = vmul.f32 %v1308_v24, %v1300_v52  ;;  %v1289_v7 = vsub.f32 0.0, %v1273_v39 }
 0x1e7   : > { %v1325_v29 = vpack.c.bf16 %v1320_v35, %v1319_v3  ;;  %v1298_v31 = vsel %vm1282_vm0, %v1274_v63, %v1290_v11 }
 0x1e8   : > { %v1323_v44 = vpack.c.bf16 %v1316_v1, %v1315_v49  ;;  %v1297_v57 = vsel %vm1281_vm1, %v1273_v39, %v1289_v7  ;;  %v1314_v15 = vadd.f32 1.0, %v1298_v31 }
 0x1e9   : > { %v1313_v22 = vadd.f32 1.0, %v1297_v57 }
 0x1ea   : > { %1745 = vmatprep.mubr.bf16.mxu1 %v1323_v44  ;;  %v1322_v51 = vmul.f32 %v1314_v15, %v1306_v55 }
 0x1eb   : > { %1746 = vmatmul.mubr.bf16.vlgmr.msra.gmra.mrb[0].mxu1 %v1324_v56  ;;  %v1321_v30 = vmul.f32 %v1313_v22, %v1305_v28 }
 0x1ec   : > { %1749 = vmatprep.mubr.bf16.mxu1 %v1325_v29 }
 0x1ed   : > { %v1326_v46 = vpack.c.bf16 %v1322_v51, %v1321_v30 }
 0x1f3   : > { %1750 = vmatmul.mubr.bf16.gmra.mrb[4].mxu1 %v1326_v46 }
 0x2be   : > { %v1747_v19 = vpop.f32.mrb[0].mxu1 }
 0x2bf   : > { %v1432_v8 = vpop.f32.mrb[1].mxu1  ;;  %v1441_v41 = vadd.f32 %v1747_v19, %v1627_v4 }
 0x2c0   : > { %v1748_v48 = vpop.f32.mrb[2].mxu1  ;;  %v1433_v13 = vadd.f32 %v1627_v4, %v1432_v8 }
 0x2c1   : > { %v1444_v27 = vadd.f32 %v1748_v48, %v1627_v4  ;;  %v1435_v53 = vpop.f32.mrb[3].mxu1 }
 0x2c2   : > { %v1436_v47 = vadd.f32 %v1627_v4, %v1435_v53 }
 0x2c3   : > { %v1666_v34 = vpack.c.bf16 %v1444_v27, %v1441_v41 }
 0x2c4   : > { %v1661_v23 = vpack.c.bf16 %v1436_v47, %v1433_v13 }
 0x2c5   : > { %1678 = vst [vmem:[%s329_s21 + $0x8] sm:$0xff] %v1666_v34  }
 0x2c6   : > { %1662 = vst [vmem:[%s329_s21] sm:$0xff] %v1661_v23   ;;  %v1751_v60 = vpop.f32.mrb[4].mxu1 }
 0x2c7   : > { %v1448_v0 = vpop.f32.mrb[5].mxu1  ;;  %v1457_v54 = vadd.f32 %v1751_v60, %v1627_v4 }
 0x2c8   : > { %v1752_v40 = vpop.f32.mrb[6].mxu1  ;;  %v1449_v37 = vadd.f32 %v1627_v4, %v1448_v0 }
 0x2c9   : > { %v1460_v62 = vadd.f32 %v1752_v40, %v1627_v4  ;;  %v1451_v26 = vpop.f32.mrb[7].mxu1 }
 0x2ca   : > { %v1452_v58 = vadd.f32 %v1627_v4, %v1451_v26 }
 0x2cb   : > { %v1676_v50 = vpack.c.bf16 %v1460_v62, %v1457_v54 }
 0x2cc   : > { %v1671_v38 = vpack.c.bf16 %v1452_v58, %v1449_v37 }
 0x2cd   : > { %1680 = vst [vmem:[%s329_s21 + $0x18] sm:$0xff] %v1676_v50  }
 0x2ce   : > { %1679 = vst [vmem:[%s329_s21 + $0x10] sm:$0xff] %v1671_v38  }
 0x2cf   : > { %1987 = shalt.err (!%p1984_p11)
}
 0x2d0   : > { %s1988_s29 = scalar_lea.hbm %s2986_s10, 512  ;;  %s1992_s17 = scalar_lea.hbm %s3039_s8, 1024 }
 0x2d1   : > { %p1989_p13 = scmp.ne.s32.totalorder %s2986_s10, %s1988_s29  ;;  %p1993_p6 = scmp.lt.u32.totalorder %s2986_s10, %s3039_s8 }
 0x2d2   : > { %p1994_p9 = scmp.lt.u32.totalorder %s1992_s17, %s1988_s29  ;;  %p1996_p12 = scmp.lt.u32.totalorder %s1988_s29, %s2986_s10 }
 0x2d3   : > { %p1990_p5 = pnand %p1989_p13, %p3055_p1 }
 0x2d4   : > { %p1995_p10 = por %p1994_p9, %p1993_p6 }
 0x2d5   : > { %p1991_p0 = pneg %p1990_p5 }
 0x2d6   : > { %p1997_p2 = por %p1996_p12, %p1995_p10 }
 0x2d8   : > { %p1998_p3 = pnand %p1997_p2, %p1991_p0 }
 0x2da   : > { %2001 = shalt.err (!%p1998_p3)
}
 0x2db   : > { %s2055_s25 = smov 64   ;;  %s2056_s23 = smov 4  }
 0x2dc   : > { %1761 = dma.vmem_to_hbm [thread:$0]  (%p3055_p1), %s2981_s24, 512, %s2986_s10, %s2990_s12, %s2055_s25, %s2055_s25, %s2056_s23  }
 0x2dd PF: > { %p1778_p4 = scmp.ge.s32.totalorder %s2044_s30, 2  ;;  %s1532_s26 = sand.u32 1, %s2032_s27  }
 0x2de   : > { %p3056_p7 = scmp.ne.s32.totalorder %s3047_s16, 0  ;;  %s1533_s9 = scalar_lea.sflag [#allocation4], %s1532_s26 }
 0x2e0   : > { %p1771_p8 = pnand %p1778_p4, %p3056_p7 }
 0x2e2   : > { %2027 = dma.done.wait (!%p1771_p8), %s1533_s9, 512  }
 0x2e3   : > { %2029 = vsyncadd (!%p1771_p8), %s1533_s9, 4294966784  ;;  %s3057_s13 = sld [smem:[#allocation11_spill]]  ;;  %s3058_s29 = sld [smem:[#allocation12_spill]] }
 0x2e4   : > { %p20_p11 = scmp.ge.s32.totalorder %s2127_s11, 4   ;;  %s3059_s27 = smov %s2036_s28 }
 0x2e5   : > { %s3061_s30 = smov %s2127_s11 }
 0x2e6   :  { %22 = sbr.rel (!%p20_p11) target bundleno = 5 (0x5), region = 96 }
 0x2e9   : > { %s3060_s28 = smov %s3057_s13 }
 0x2ed   :  { %1538 = vsyncpa [#allocation3], 1 }
 0x2ee   :  { %1540 = vsyncpa [#allocation3 + $0x1], 1 }
 0x2ef   :  { %1541 = vsyncpa [#allocation6], 1 }
 0x2f0   :  { %1542 = vsyncpa [#allocation4], 1 }
 0x2f1   :  { %1544 = vsyncpa [#allocation4 + $0x1], 1 }

</bundles_post_ra>
